<compile_context>
chip_gen: v7x
topology: tpu7x:2x2x1
jax: 0.10.0
libtpu: 0.0.40
codegen_flags: <defaults>
</compile_context>

<pallas_src>
import functools

import jax
import jax.numpy as jnp
from jax.experimental import pallas as pl
from jax.experimental.pallas import tpu as pltpu


def _round_up(x, m):
    return ((x + m - 1) // m) * m


def _round_down(x, m):
    return (x // m) * m


def _vmem_cap_bytes():
    """~80% of per-core VMEM; falls back to the v7x per-TC figure if unqueryable."""
    try:
        phys = int(pltpu.get_tpu_info().vmem_capacity_bytes)
    except Exception:
        phys = 64 << 20
    return (phys * 4) // 5


def _projector_kernel(x_ref, w1_ref, b1_ref, w2_ref, b2_ref, g_ref, beta_ref,
                      o_ref, acc_ref, *, eps):
    """One (bm, D_in) row tile x one hidden slice (tk) -> accumulate (bm, D_out)."""
    k = pl.program_id(1)

    @pl.when(k == 0)
    def _():
        acc_ref[...] = jnp.zeros_like(acc_ref)

    # Linear 1 on the current hidden slice: native-dtype MXU operands, f32 accumulator.
    h = jnp.dot(x_ref[...], w1_ref[...], preferred_element_type=jnp.float32)
    h = h + b1_ref[...].astype(jnp.float32)

    # Exact (erf-based) GELU in f32, matching torch.nn.GELU() default.
    # TODO(synk): switch to tanh-approx GELU (routes to the EUP slot) only if a bundle
    # profile shows the erf polynomial saturating VALU and the accuracy delta is OK.
    h = 0.5 * h * (1.0 + jax.lax.erf(h * 0.7071067811865476))

    # Linear 2 contribution of this hidden slice; accumulate in the f32 scratch.
    # (h is rounded to the weight dtype so bf16 weights keep the bf16 MXU rate.)
    acc_ref[...] += jnp.dot(h.astype(w2_ref.dtype), w2_ref[...],
                            preferred_element_type=jnp.float32)

    @pl.when(k == pl.num_programs(1) - 1)
    def _():
        y = acc_ref[...] + b2_ref[...].astype(jnp.float32)
        # One-pass LayerNorm stats: mean and E[y^2] (biased variance), f32 epilogue.
        mean = jnp.mean(y, axis=-1, keepdims=True)
        var = jnp.mean(y * y, axis=-1, keepdims=True) - mean * mean
        y = (y - mean) * jax.lax.rsqrt(var + eps)
        o_ref[...] = (y * g_ref[...].astype(jnp.float32)
                      + beta_ref[...].astype(jnp.float32)).astype(o_ref.dtype)


def audio_projector(x, params, *, block_m=None, block_k=None, eps=1e-5):
    """x: (batch, seq, input_dim) -> (batch, seq, output_dim)."""
    w1, b1, w2, b2, gamma, beta = params
    B, S, D_in = x.shape
    H = w1.shape[1]
    D_out = w2.shape[1]
    M = B * S

    x2 = x.reshape(M, D_in)
    in_it = x2.dtype.itemsize
    out_it = in_it
    w_it = w1.dtype.itemsize
    # Sublane multiple for the row tile: 8 (f32) / 16 (bf16) / 32 (int8, fp8).
    sublane = max(8, 32 // in_it)

    cap = _vmem_cap_bytes()

    # --- Hidden-dim tiling: keep W1/W2 fully resident (single-buffered) when they fit
    #     comfortably, otherwise split H across a trailing "arbitrary" reduction axis.
    if block_k is None:
        w_full = (D_in * H + H * D_out + H) * w_it
        if w_full <= cap // 2:
            block_k = H
        else:
            block_k = H
            tk_try = _round_down(H, 128)
            while tk_try >= 128:
                if H % tk_try == 0 and 2 * (D_in + D_out + 1) * tk_try * w_it <= cap // 2:
                    block_k = tk_try
                    break
                tk_try -= 128
    assert H % block_k == 0, "block_k must divide the hidden dim"
    # TODO(synk): pad H instead of asserting if a non-divisor block_k is ever needed.
    tk = block_k
    num_k = H // tk

    # --- Corrected VMEM accounting (single factor of 2 only where actually buffered).
    wbuf = 1 if num_k == 1 else 2            # resident weights are single-buffered
    fixed = (wbuf * (D_in * tk + tk * D_out + tk) * w_it   # W1 / W2 / b1 slices
             + 3 * D_out * w_it)                           # b2, gamma, beta
    per_row = (2 * D_in * in_it          # x tile (double-buffered)
               + 2 * D_out * out_it      # output tile (double-buffered)
               + 4 * D_out               # f32 accumulator scratch
               + 4 * tk                  # f32 hidden activation
               + tk * w_it               # hidden activation cast to weight dtype
               + 4 * D_out)              # f32 y temp in the finalize
    bm_fit = max((cap - fixed) // per_row, sublane)
    bm_fit = max(_round_down(bm_fit, sublane), sublane)

    target = block_m if block_m is not None else 512
    bm = min(_round_up(target, sublane), bm_fit, _round_up(M, sublane))
    # Keep at least two row tiles so the "parallel" axis can shard across TensorCores.
    if M > sublane:
        bm = min(bm, _round_up(pl.cdiv(M, 2), sublane))
    bm = max(sublane, bm)
    num_m = pl.cdiv(M, bm)

    need = fixed + per_row * bm
    vmem_limit = int(min(cap, max(need + need // 4, 32 << 20)))

    # Bias / affine params as (1, D) lane-major rows.
    b1_2 = b1.reshape(1, H)
    b2_2 = b2.reshape(1, D_out)
    g_2 = gamma.reshape(1, D_out)
    beta_2 = beta.reshape(1, D_out)

    flops = 2 * M * (D_in * H + H * D_out)
    w_bytes = (D_in * H + H * D_out + H) * w_it * (num_m if num_k > 1 else 1)
    bytes_accessed = (M * D_in * in_it + M * D_out * out_it + w_bytes
                      + 3 * D_out * w_it)
    cost = pl.CostEstimate(flops=flops, transcendentals=M * H,
                           bytes_accessed=bytes_accessed)

    kernel = functools.partial(_projector_kernel, eps=eps)
    out_shape = jax.ShapeDtypeStruct((M, D_out), x.dtype)

    def build_and_run(single_buffer_consts):
        def spec(shape, index_map, const_index):
            if const_index and single_buffer_consts:
                return pl.BlockSpec(shape, index_map, pipeline_mode=pl.Buffered(1))
            return pl.BlockSpec(shape, index_map)

        resident = num_k == 1
        return pl.pallas_call(
            kernel,
            out_shape=out_shape,
            grid_spec=pltpu.PrefetchScalarGridSpec(
                num_scalar_prefetch=0,
                grid=(num_m, num_k),
                in_specs=[
                    pl.BlockSpec((bm, D_in), lambda i, k: (i, 0)),     # x row tile
                    spec((D_in, tk), lambda i, k: (0, k), resident),   # W1 slice
                    spec((1, tk), lambda i, k: (0, k), resident),      # b1 slice
                    spec((tk, D_out), lambda i, k: (k, 0), resident),  # W2 slice
                    spec((1, D_out), lambda i, k: (0, 0), True),       # b2
                    spec((1, D_out), lambda i, k: (0, 0), True),       # gamma
                    spec((1, D_out), lambda i, k: (0, 0), True),       # beta
                ],
                out_specs=pl.BlockSpec((bm, D_out), lambda i, k: (i, 0)),
                scratch_shapes=[pltpu.VMEM((bm, D_out), jnp.float32)],
            ),
            compiler_params=pltpu.CompilerParams(
                dimension_semantics=("parallel", "arbitrary"),
                vmem_limit_bytes=vmem_limit),
            cost_estimate=cost,
        )(x2, w1, b1_2, w2, b2_2, g_2, beta_2)

    use_single = hasattr(pl, "Buffered")
    try:
        out = build_and_run(use_single)
    except Exception:
        if not use_single:
            raise
        # Fallback for environments where pipeline_mode=pl.Buffered(1) is rejected;
        # the genuine error (if any) re-raises from the second attempt.
        out = build_and_run(False)

    return out.reshape(B, S, D_out)


def init_params(key, input_dim, output_dim, hidden_dim=None, dtype=jnp.float32):
    """Deterministic synthetic params matching nn.Linear / nn.LayerNorm shapes."""
    if hidden_dim is None:
        hidden_dim = (input_dim + output_dim) // 2
    k1, k2, k3, k4 = jax.random.split(key, 4)
    # Linear weights stored transposed relative to PyTorch: (in, out).
    lim1 = 1.0 / jnp.sqrt(input_dim)
    lim2 = 1.0 / jnp.sqrt(hidden_dim)
    w1 = jax.random.uniform(k1, (input_dim, hidden_dim), dtype, -lim1, lim1)
    b1 = jax.random.uniform(k2, (hidden_dim,), dtype, -lim1, lim1)
    w2 = jax.random.uniform(k3, (hidden_dim, output_dim), dtype, -lim2, lim2)
    b2 = jax.random.uniform(k4, (output_dim,), dtype, -lim2, lim2)
    gamma = jnp.ones((output_dim,), dtype)
    beta = jnp.zeros((output_dim,), dtype)
    return (w1, b1, w2, b2, gamma, beta)


def _reference(x, params, eps=1e-5):
    w1, b1, w2, b2, gamma, beta = params
    h = x @ w1 + b1
    h = 0.5 * h * (1.0 + jax.lax.erf(h / jnp.sqrt(2.0)))
    y = h @ w2 + b2
    mean = jnp.mean(y, axis=-1, keepdims=True)
    var = jnp.mean(jnp.square(y - mean), axis=-1, keepdims=True)
    return (y - mean) * jax.lax.rsqrt(var + eps) * gamma + beta


if __name__ == "__main__":
    key = jax.random.PRNGKey(0)
    kx, kp, kx2 = jax.random.split(key, 3)

    # Lane-dense (multiple-of-128) feature dims; hidden_dim = (256 + 256) // 2 = 256.
    batch, seq = 2, 8
    input_dim, output_dim = 256, 256

    x = jax.random.normal(kx, (batch, seq, input_dim), jnp.float32)
    params = init_params(kp, input_dim, output_dim)

    # 1) Fully resident-weight path (num_k == 1); small M -> 2 row tiles (megacore).
    out = jax.block_until_ready(audio_projector(x, params))
    ref = _reference(x, params)
    assert out.shape == (batch, seq, output_dim)
    assert jnp.allclose(out, ref, atol=2e-3, rtol=2e-3), "mismatch (resident path)"

    # 2) Token count not a multiple of the row tile -> exercises the partial tail tile
    #    (no wrapper pad / output slice anymore).
    x_big = jax.random.normal(kx2, (2, 300, input_dim), jnp.float32)
    out_big = jax.block_until_ready(audio_projector(x_big, params))
    ref_big = _reference(x_big, params)
    assert out_big.shape == (2, 300, output_dim)
    assert jnp.allclose(out_big, ref_big, atol=2e-3, rtol=2e-3), "mismatch (tail path)"

    # 3) Forced hidden-dim split (num_k == 2) -> exercises the accumulate/finalize path
    #    used when the weights exceed the VMEM budget (v7x large-dim configs).
    out_k = jax.block_until_ready(audio_projector(x, params, block_k=128))
    assert jnp.allclose(out_k, ref, atol=2e-3, rtol=2e-3), "mismatch (split-H path)"

    print("KERNEL_OK")
</pallas_src>

<mosaic_0001>
module attributes {stable_mosaic.version = 11 : i64} {
  func.func @_projector_kernel(%arg0: i32, %arg1: i32, %arg2: memref<8x256xf32, #tpu.memory_space<vmem>>, %arg3: memref<256x256xf32, #tpu.memory_space<vmem>>, %arg4: memref<1x256xf32, #tpu.memory_space<vmem>>, %arg5: memref<256x256xf32, #tpu.memory_space<vmem>>, %arg6: memref<1x256xf32, #tpu.memory_space<vmem>>, %arg7: memref<1x256xf32, #tpu.memory_space<vmem>>, %arg8: memref<1x256xf32, #tpu.memory_space<vmem>>, %arg9: memref<8x256xf32, #tpu.memory_space<vmem>>, %arg10: memref<8x256xf32, #tpu.memory_space<vmem>>) attributes {dimension_semantics = [#tpu.dimension_semantics<parallel>, #tpu.dimension_semantics<arbitrary>], iteration_bounds = array<i64: 2, 1>, scalar_prefetch = 0 : i64, scratch_operands = 1 : i64, tpu.core_type = #tpu.core_type<tc>, window_params = [{transform_indices = @transform_0, window_bounds = array<i64: 8, 256>}, {pipeline_mode = #tpu.pipeline_mode<synchronous>, transform_indices = @transform_1, window_bounds = array<i64: 256, 256>}, {pipeline_mode = #tpu.pipeline_mode<synchronous>, transform_indices = @transform_2, window_bounds = array<i64: 1, 256>}, {pipeline_mode = #tpu.pipeline_mode<synchronous>, transform_indices = @transform_3, window_bounds = array<i64: 256, 256>}, {pipeline_mode = #tpu.pipeline_mode<synchronous>, transform_indices = @transform_4, window_bounds = array<i64: 1, 256>}, {pipeline_mode = #tpu.pipeline_mode<synchronous>, transform_indices = @transform_5, window_bounds = array<i64: 1, 256>}, {pipeline_mode = #tpu.pipeline_mode<synchronous>, transform_indices = @transform_6, window_bounds = array<i64: 1, 256>}, {transform_indices = @transform_7, window_bounds = array<i64: 8, 256>}]} {
    %c0_i32 = arith.constant 0 : i32
    %0 = arith.cmpi eq, %arg1, %c0_i32 : i32
    %1 = arith.extui %0 : i1 to i32
    %c0_i32_0 = arith.constant 0 : i32
    %2 = arith.cmpi ne, %1, %c0_i32_0 : i32
    scf.if %2 {
      %cst_18 = arith.constant 0.000000e+00 : f32
      %25 = vector.broadcast %cst_18 : f32 to vector<8x256xf32>
      %c0_19 = arith.constant 0 : index
      %c0_20 = arith.constant 0 : index
      %26 = vector.load %arg10[%c0_19, %c0_20] : memref<8x256xf32, #tpu.memory_space<vmem>>, vector<8x256xf32>
      tpu.vector_store %arg10[%c0_19, %c0_20], %25 {strides = array<i32>} : memref<8x256xf32, #tpu.memory_space<vmem>>, vector<8x256xf32>,
    } else {
    }
    %c0 = arith.constant 0 : index
    %c0_1 = arith.constant 0 : index
    %3 = vector.load %arg2[%c0, %c0_1] : memref<8x256xf32, #tpu.memory_space<vmem>>, vector<8x256xf32>
    %c0_2 = arith.constant 0 : index
    %c0_3 = arith.constant 0 : index
    %4 = vector.load %arg3[%c0_2, %c0_3] : memref<256x256xf32, #tpu.memory_space<vmem>>, vector<256x256xf32>
    %cst = arith.constant dense<0.000000e+00> : vector<8x256xf32>
    %5 = tpu.matmul %3, %4, %cst {dimension_numbers = #tpu.dot_dimension_numbers<[1], [0], [0], [1], [0, 0, 1, 1], [], []>} : vector<8x256xf32>, vector<256x256xf32>, vector<8x256xf32> -> vector<8x256xf32>
    %c0_4 = arith.constant 0 : index
    %c0_5 = arith.constant 0 : index
    %6 = vector.load %arg4[%c0_4, %c0_5] : memref<1x256xf32, #tpu.memory_space<vmem>>, vector<1x256xf32>
    %7 = vector.broadcast %6 : vector<1x256xf32> to vector<8x256xf32>
    %8 = arith.addf %5, %7 : vector<8x256xf32>
    %cst_6 = arith.constant 5.000000e-01 : f32
    %9 = vector.broadcast %cst_6 : f32 to vector<8x256xf32>
    %10 = arith.mulf %9, %8 : vector<8x256xf32>
    %cst_7 = arith.constant 0.707106769 : f32
    %11 = vector.broadcast %cst_7 : f32 to vector<8x256xf32>
    %12 = arith.mulf %8, %11 : vector<8x256xf32>
    %13 = math.erf %12 : vector<8x256xf32>
    %cst_8 = arith.constant 1.000000e+00 : f32
    %14 = vector.broadcast %cst_8 : f32 to vector<8x256xf32>
    %15 = arith.addf %14, %13 : vector<8x256xf32>
    %16 = arith.mulf %10, %15 : vector<8x256xf32>
    %c0_9 = arith.constant 0 : index
    %c0_10 = arith.constant 0 : index
    %17 = vector.load %arg10[%c0_9, %c0_10] : memref<8x256xf32, #tpu.memory_space<vmem>>, vector<8x256xf32>
    %c0_11 = arith.constant 0 : index
    %c0_12 = arith.constant 0 : index
    %18 = vector.load %arg5[%c0_11, %c0_12] : memref<256x256xf32, #tpu.memory_space<vmem>>, vector<256x256xf32>
    %cst_13 = arith.constant dense<0.000000e+00> : vector<8x256xf32>
    %19 = tpu.matmul %16, %18, %cst_13 {dimension_numbers = #tpu.dot_dimension_numbers<[1], [0], [0], [1], [0, 0, 1, 1], [], []>} : vector<8x256xf32>, vector<256x256xf32>, vector<8x256xf32> -> vector<8x256xf32>
    %20 = arith.addf %17, %19 : vector<8x256xf32>
    %c0_14 = arith.constant 0 : index
    %c0_15 = arith.constant 0 : index
    %21 = vector.load %arg10[%c0_14, %c0_15] : memref<8x256xf32, #tpu.memory_space<vmem>>, vector<8x256xf32>
    tpu.vector_store %arg10[%c0_14, %c0_15], %20 {strides = array<i32>} : memref<8x256xf32, #tpu.memory_space<vmem>>, vector<8x256xf32>,
    %c0_i32_16 = arith.constant 0 : i32
    %22 = arith.cmpi eq, %arg1, %c0_i32_16 : i32
    %23 = arith.extui %22 : i1 to i32
    %c0_i32_17 = arith.constant 0 : i32
    %24 = arith.cmpi ne, %23, %c0_i32_17 : i32
    scf.if %24 {
      %c0_18 = arith.constant 0 : index
      %c0_19 = arith.constant 0 : index
      %25 = vector.load %arg10[%c0_18, %c0_19] : memref<8x256xf32, #tpu.memory_space<vmem>>, vector<8x256xf32>
      %c0_20 = arith.constant 0 : index
      %c0_21 = arith.constant 0 : index
      %26 = vector.load %arg6[%c0_20, %c0_21] : memref<1x256xf32, #tpu.memory_space<vmem>>, vector<1x256xf32>
      %27 = vector.broadcast %26 : vector<1x256xf32> to vector<8x256xf32>
      %28 = arith.addf %25, %27 : vector<8x256xf32>
      %cst_22 = arith.constant dense<0.000000e+00> : vector<8xf32>
      %29 = vector.multi_reduction <add>, %28, %cst_22 [1] : vector<8x256xf32> to vector<8xf32>
      %30 = vector.shape_cast %29 : vector<8xf32> to vector<8x1xf32>
      %cst_23 = arith.constant 2.560000e+02 : f32
      %31 = vector.broadcast %cst_23 : f32 to vector<8x1xf32>
      %32 = arith.divf %30, %31 : vector<8x1xf32>
      %33 = arith.mulf %28, %28 : vector<8x256xf32>
      %cst_24 = arith.constant dense<0.000000e+00> : vector<8xf32>
      %34 = vector.multi_reduction <add>, %33, %cst_24 [1] : vector<8x256xf32> to vector<8xf32>
      %35 = vector.shape_cast %34 : vector<8xf32> to vector<8x1xf32>
      %cst_25 = arith.constant 2.560000e+02 : f32
      %36 = vector.broadcast %cst_25 : f32 to vector<8x1xf32>
      %37 = arith.divf %35, %36 : vector<8x1xf32>
      %38 = arith.mulf %32, %32 : vector<8x1xf32>
      %39 = arith.subf %37, %38 : vector<8x1xf32>
      %40 = vector.broadcast %32 : vector<8x1xf32> to vector<8x256xf32>
      %41 = arith.subf %28, %40 : vector<8x256xf32>
      %cst_26 = arith.constant 9.99999974E-6 : f32
      %42 = vector.broadcast %cst_26 : f32 to vector<8x1xf32>
      %43 = arith.addf %39, %42 : vector<8x1xf32>
      %44 = math.rsqrt %43 : vector<8x1xf32>
      %45 = vector.broadcast %44 : vector<8x1xf32> to vector<8x256xf32>
      %46 = arith.mulf %41, %45 : vector<8x256xf32>
      %c0_27 = arith.constant 0 : index
      %c0_28 = arith.constant 0 : index
      %47 = vector.load %arg7[%c0_27, %c0_28] : memref<1x256xf32, #tpu.memory_space<vmem>>, vector<1x256xf32>
      %48 = vector.broadcast %47 : vector<1x256xf32> to vector<8x256xf32>
      %49 = arith.mulf %46, %48 : vector<8x256xf32>
      %c0_29 = arith.constant 0 : index
      %c0_30 = arith.constant 0 : index
      %50 = vector.load %arg8[%c0_29, %c0_30] : memref<1x256xf32, #tpu.memory_space<vmem>>, vector<1x256xf32>
      %51 = vector.broadcast %50 : vector<1x256xf32> to vector<8x256xf32>
      %52 = arith.addf %49, %51 : vector<8x256xf32>
      %c0_31 = arith.constant 0 : index
      %c0_32 = arith.constant 0 : index
      %53 = vector.load %arg9[%c0_31, %c0_32] : memref<8x256xf32, #tpu.memory_space<vmem>>, vector<8x256xf32>
      tpu.vector_store %arg9[%c0_31, %c0_32], %52 {strides = array<i32>} : memref<8x256xf32, #tpu.memory_space<vmem>>, vector<8x256xf32>,
    } else {
    }
    return
  }
  func.func @transform_0(%arg0: i32, %arg1: i32) -> (i32, i32) {
    %c0_i32 = arith.constant 0 : i32
    %c0_i32_0 = arith.constant 0 : i32
    return %arg0, %c0_i32 : i32, i32
  }
  func.func @transform_1(%arg0: i32, %arg1: i32) -> (i32, i32) {
    %c0_i32 = arith.constant 0 : i32
    %c0_i32_0 = arith.constant 0 : i32
    return %c0_i32, %arg1 : i32, i32
  }
  func.func @transform_2(%arg0: i32, %arg1: i32) -> (i32, i32) {
    %c0_i32 = arith.constant 0 : i32
    %c0_i32_0 = arith.constant 0 : i32
    return %c0_i32, %arg1 : i32, i32
  }
  func.func @transform_3(%arg0: i32, %arg1: i32) -> (i32, i32) {
    %c0_i32 = arith.constant 0 : i32
    %c0_i32_0 = arith.constant 0 : i32
    return %arg1, %c0_i32 : i32, i32
  }
  func.func @transform_4(%arg0: i32, %arg1: i32) -> (i32, i32) {
    %c0_i32 = arith.constant 0 : i32
    %c0_i32_0 = arith.constant 0 : i32
    %c0_i32_1 = arith.constant 0 : i32
    return %c0_i32, %c0_i32_0 : i32, i32
  }
  func.func @transform_5(%arg0: i32, %arg1: i32) -> (i32, i32) {
    %c0_i32 = arith.constant 0 : i32
    %c0_i32_0 = arith.constant 0 : i32
    %c0_i32_1 = arith.constant 0 : i32
    return %c0_i32, %c0_i32_0 : i32, i32
  }
  func.func @transform_6(%arg0: i32, %arg1: i32) -> (i32, i32) {
    %c0_i32 = arith.constant 0 : i32
    %c0_i32_0 = arith.constant 0 : i32
    %c0_i32_1 = arith.constant 0 : i32
    return %c0_i32, %c0_i32_0 : i32, i32
  }
  func.func @transform_7(%arg0: i32, %arg1: i32) -> (i32, i32) {
    %c0_i32 = arith.constant 0 : i32
    %c0_i32_0 = arith.constant 0 : i32
    return %arg0, %c0_i32 : i32, i32
  }
}

module attributes {stable_mosaic.version = 11 : i64} {
  func.func @_projector_kernel(%arg0: i32, %arg1: i32, %arg2: memref<8x256xf32, #tpu.memory_space<vmem>>, %arg3: memref<256x256xf32, #tpu.memory_space<vmem>>, %arg4: memref<1x256xf32, #tpu.memory_space<vmem>>, %arg5: memref<256x256xf32, #tpu.memory_space<vmem>>, %arg6: memref<1x256xf32, #tpu.memory_space<vmem>>, %arg7: memref<1x256xf32, #tpu.memory_space<vmem>>, %arg8: memref<1x256xf32, #tpu.memory_space<vmem>>, %arg9: memref<8x256xf32, #tpu.memory_space<vmem>>, %arg10: memref<8x256xf32, #tpu.memory_space<vmem>>) attributes {dimension_semantics = [#tpu.dimension_semantics<parallel>, #tpu.dimension_semantics<arbitrary>], iteration_bounds = array<i64: 2, 1>, scalar_prefetch = 0 : i64, scratch_operands = 1 : i64, tpu.core_type = #tpu.core_type<tc>, window_params = [{transform_indices = @transform_0, window_bounds = array<i64: 8, 256>}, {transform_indices = @transform_1, window_bounds = array<i64: 256, 256>}, {transform_indices = @transform_2, window_bounds = array<i64: 1, 256>}, {transform_indices = @transform_3, window_bounds = array<i64: 256, 256>}, {pipeline_mode = #tpu.pipeline_mode<synchronous>, transform_indices = @transform_4, window_bounds = array<i64: 1, 256>}, {pipeline_mode = #tpu.pipeline_mode<synchronous>, transform_indices = @transform_5, window_bounds = array<i64: 1, 256>}, {pipeline_mode = #tpu.pipeline_mode<synchronous>, transform_indices = @transform_6, window_bounds = array<i64: 1, 256>}, {transform_indices = @transform_7, window_bounds = array<i64: 8, 256>}]} {
    %c0_i32 = arith.constant 0 : i32
    %0 = arith.cmpi eq, %arg1, %c0_i32 : i32
    %1 = arith.extui %0 : i1 to i32
    %c0_i32_0 = arith.constant 0 : i32
    %2 = arith.cmpi ne, %1, %c0_i32_0 : i32
    scf.if %2 {
      %cst_18 = arith.constant 0.000000e+00 : f32
      %25 = vector.broadcast %cst_18 : f32 to vector<8x256xf32>
      %c0_19 = arith.constant 0 : index
      %c0_20 = arith.constant 0 : index
      %26 = vector.load %arg10[%c0_19, %c0_20] : memref<8x256xf32, #tpu.memory_space<vmem>>, vector<8x256xf32>
      tpu.vector_store %arg10[%c0_19, %c0_20], %25 {strides = array<i32>} : memref<8x256xf32, #tpu.memory_space<vmem>>, vector<8x256xf32>,
    } else {
    }
    %c0 = arith.constant 0 : index
    %c0_1 = arith.constant 0 : index
    %3 = vector.load %arg2[%c0, %c0_1] : memref<8x256xf32, #tpu.memory_space<vmem>>, vector<8x256xf32>
    %c0_2 = arith.constant 0 : index
    %c0_3 = arith.constant 0 : index
    %4 = vector.load %arg3[%c0_2, %c0_3] : memref<256x256xf32, #tpu.memory_space<vmem>>, vector<256x256xf32>
    %cst = arith.constant dense<0.000000e+00> : vector<8x256xf32>
    %5 = tpu.matmul %3, %4, %cst {dimension_numbers = #tpu.dot_dimension_numbers<[1], [0], [0], [1], [0, 0, 1, 1], [], []>} : vector<8x256xf32>, vector<256x256xf32>, vector<8x256xf32> -> vector<8x256xf32>
    %c0_4 = arith.constant 0 : index
    %c0_5 = arith.constant 0 : index
    %6 = vector.load %arg4[%c0_4, %c0_5] : memref<1x256xf32, #tpu.memory_space<vmem>>, vector<1x256xf32>
    %7 = vector.broadcast %6 : vector<1x256xf32> to vector<8x256xf32>
    %8 = arith.addf %5, %7 : vector<8x256xf32>
    %cst_6 = arith.constant 5.000000e-01 : f32
    %9 = vector.broadcast %cst_6 : f32 to vector<8x256xf32>
    %10 = arith.mulf %9, %8 : vector<8x256xf32>
    %cst_7 = arith.constant 0.707106769 : f32
    %11 = vector.broadcast %cst_7 : f32 to vector<8x256xf32>
    %12 = arith.mulf %8, %11 : vector<8x256xf32>
    %13 = math.erf %12 : vector<8x256xf32>
    %cst_8 = arith.constant 1.000000e+00 : f32
    %14 = vector.broadcast %cst_8 : f32 to vector<8x256xf32>
    %15 = arith.addf %14, %13 : vector<8x256xf32>
    %16 = arith.mulf %10, %15 : vector<8x256xf32>
    %c0_9 = arith.constant 0 : index
    %c0_10 = arith.constant 0 : index
    %17 = vector.load %arg10[%c0_9, %c0_10] : memref<8x256xf32, #tpu.memory_space<vmem>>, vector<8x256xf32>
    %c0_11 = arith.constant 0 : index
    %c0_12 = arith.constant 0 : index
    %18 = vector.load %arg5[%c0_11, %c0_12] : memref<256x256xf32, #tpu.memory_space<vmem>>, vector<256x256xf32>
    %cst_13 = arith.constant dense<0.000000e+00> : vector<8x256xf32>
    %19 = tpu.matmul %16, %18, %cst_13 {dimension_numbers = #tpu.dot_dimension_numbers<[1], [0], [0], [1], [0, 0, 1, 1], [], []>} : vector<8x256xf32>, vector<256x256xf32>, vector<8x256xf32> -> vector<8x256xf32>
    %20 = arith.addf %17, %19 : vector<8x256xf32>
    %c0_14 = arith.constant 0 : index
    %c0_15 = arith.constant 0 : index
    %21 = vector.load %arg10[%c0_14, %c0_15] : memref<8x256xf32, #tpu.memory_space<vmem>>, vector<8x256xf32>
    tpu.vector_store %arg10[%c0_14, %c0_15], %20 {strides = array<i32>} : memref<8x256xf32, #tpu.memory_space<vmem>>, vector<8x256xf32>,
    %c0_i32_16 = arith.constant 0 : i32
    %22 = arith.cmpi eq, %arg1, %c0_i32_16 : i32
    %23 = arith.extui %22 : i1 to i32
    %c0_i32_17 = arith.constant 0 : i32
    %24 = arith.cmpi ne, %23, %c0_i32_17 : i32
    scf.if %24 {
      %c0_18 = arith.constant 0 : index
      %c0_19 = arith.constant 0 : index
      %25 = vector.load %arg10[%c0_18, %c0_19] : memref<8x256xf32, #tpu.memory_space<vmem>>, vector<8x256xf32>
      %c0_20 = arith.constant 0 : index
      %c0_21 = arith.constant 0 : index
      %26 = vector.load %arg6[%c0_20, %c0_21] : memref<1x256xf32, #tpu.memory_space<vmem>>, vector<1x256xf32>
      %27 = vector.broadcast %26 : vector<1x256xf32> to vector<8x256xf32>
      %28 = arith.addf %25, %27 : vector<8x256xf32>
      %cst_22 = arith.constant dense<0.000000e+00> : vector<8xf32>
      %29 = vector.multi_reduction <add>, %28, %cst_22 [1] : vector<8x256xf32> to vector<8xf32>
      %30 = vector.shape_cast %29 : vector<8xf32> to vector<8x1xf32>
      %cst_23 = arith.constant 2.560000e+02 : f32
      %31 = vector.broadcast %cst_23 : f32 to vector<8x1xf32>
      %32 = arith.divf %30, %31 : vector<8x1xf32>
      %33 = arith.mulf %28, %28 : vector<8x256xf32>
      %cst_24 = arith.constant dense<0.000000e+00> : vector<8xf32>
      %34 = vector.multi_reduction <add>, %33, %cst_24 [1] : vector<8x256xf32> to vector<8xf32>
      %35 = vector.shape_cast %34 : vector<8xf32> to vector<8x1xf32>
      %cst_25 = arith.constant 2.560000e+02 : f32
      %36 = vector.broadcast %cst_25 : f32 to vector<8x1xf32>
      %37 = arith.divf %35, %36 : vector<8x1xf32>
      %38 = arith.mulf %32, %32 : vector<8x1xf32>
      %39 = arith.subf %37, %38 : vector<8x1xf32>
      %40 = vector.broadcast %32 : vector<8x1xf32> to vector<8x256xf32>
      %41 = arith.subf %28, %40 : vector<8x256xf32>
      %cst_26 = arith.constant 9.99999974E-6 : f32
      %42 = vector.broadcast %cst_26 : f32 to vector<8x1xf32>
      %43 = arith.addf %39, %42 : vector<8x1xf32>
      %44 = math.rsqrt %43 : vector<8x1xf32>
      %45 = vector.broadcast %44 : vector<8x1xf32> to vector<8x256xf32>
      %46 = arith.mulf %41, %45 : vector<8x256xf32>
      %c0_27 = arith.constant 0 : index
      %c0_28 = arith.constant 0 : index
      %47 = vector.load %arg7[%c0_27, %c0_28] : memref<1x256xf32, #tpu.memory_space<vmem>>, vector<1x256xf32>
      %48 = vector.broadcast %47 : vector<1x256xf32> to vector<8x256xf32>
      %49 = arith.mulf %46, %48 : vector<8x256xf32>
      %c0_29 = arith.constant 0 : index
      %c0_30 = arith.constant 0 : index
      %50 = vector.load %arg8[%c0_29, %c0_30] : memref<1x256xf32, #tpu.memory_space<vmem>>, vector<1x256xf32>
      %51 = vector.broadcast %50 : vector<1x256xf32> to vector<8x256xf32>
      %52 = arith.addf %49, %51 : vector<8x256xf32>
      %c0_31 = arith.constant 0 : index
      %c0_32 = arith.constant 0 : index
      %53 = vector.load %arg9[%c0_31, %c0_32] : memref<8x256xf32, #tpu.memory_space<vmem>>, vector<8x256xf32>
      tpu.vector_store %arg9[%c0_31, %c0_32], %52 {strides = array<i32>} : memref<8x256xf32, #tpu.memory_space<vmem>>, vector<8x256xf32>,
    } else {
    }
    return
  }
  func.func @transform_0(%arg0: i32, %arg1: i32) -> (i32, i32) {
    %c0_i32 = arith.constant 0 : i32
    %c0_i32_0 = arith.constant 0 : i32
    return %arg0, %c0_i32 : i32, i32
  }
  func.func @transform_1(%arg0: i32, %arg1: i32) -> (i32, i32) {
    %c0_i32 = arith.constant 0 : i32
    %c0_i32_0 = arith.constant 0 : i32
    return %c0_i32, %arg1 : i32, i32
  }
  func.func @transform_2(%arg0: i32, %arg1: i32) -> (i32, i32) {
    %c0_i32 = arith.constant 0 : i32
    %c0_i32_0 = arith.constant 0 : i32
    return %c0_i32, %arg1 : i32, i32
  }
  func.func @transform_3(%arg0: i32, %arg1: i32) -> (i32, i32) {
    %c0_i32 = arith.constant 0 : i32
    %c0_i32_0 = arith.constant 0 : i32
    return %arg1, %c0_i32 : i32, i32
  }
  func.func @transform_4(%arg0: i32, %arg1: i32) -> (i32, i32) {
    %c0_i32 = arith.constant 0 : i32
    %c0_i32_0 = arith.constant 0 : i32
    %c0_i32_1 = arith.constant 0 : i32
    return %c0_i32, %c0_i32_0 : i32, i32
  }
  func.func @transform_5(%arg0: i32, %arg1: i32) -> (i32, i32) {
    %c0_i32 = arith.constant 0 : i32
    %c0_i32_0 = arith.constant 0 : i32
    %c0_i32_1 = arith.constant 0 : i32
    return %c0_i32, %c0_i32_0 : i32, i32
  }
  func.func @transform_6(%arg0: i32, %arg1: i32) -> (i32, i32) {
    %c0_i32 = arith.constant 0 : i32
    %c0_i32_0 = arith.constant 0 : i32
    %c0_i32_1 = arith.constant 0 : i32
    return %c0_i32, %c0_i32_0 : i32, i32
  }
  func.func @transform_7(%arg0: i32, %arg1: i32) -> (i32, i32) {
    %c0_i32 = arith.constant 0 : i32
    %c0_i32_0 = arith.constant 0 : i32
    return %arg0, %c0_i32 : i32, i32
  }
}

</mosaic_0001>

<bundles_post_ra>
// kernel: tpu_custom_call.1
= control target key start
LH: loop header
LB: loop body
LE: loop exit
PB: predicated region body
PF: predicated region fallthrough
CT: control target
= control target key end

     0   :  { %12 = vsyncpa [#allocation4], 0  ;;  %s1607_s0 = inlined_call_operand.hbm [shape: f32[16,256], index: 0, kind: input, shape index: {}]   ;;  %s1608_s1 = inlined_call_operand.hbm [shape: f32[256,256], index: 1, kind: input, shape index: {}]   ;;  %s1609_s2 = inlined_call_operand.vmem [shape: f32[1,256], index: 2, kind: input, shape index: {}]   ;;  %s1610_s3 = inlined_call_operand.hbm [shape: f32[256,256], index: 3, kind: input, shape index: {}]   ;;  %s1611_s4 = inlined_call_operand.vmem [shape: f32[1,256], index: 4, kind: input, shape index: {}]   ;;  %s1612_s5 = inlined_call_operand.vmem [shape: f32[1,256], index: 5, kind: input, shape index: {}]   ;;  %s1613_s6 = inlined_call_operand.vmem [shape: f32[1,256], index: 6, kind: input, shape index: {}]   ;;  %s1614_s7 = inlined_call_operand.hbm [shape: f32[16,256], index: 7, kind: output, shape index: {}]  }
   0x1   :  { %14 = vsyncpa [#allocation4 + $0x1], 0 }
   0x2   :  { %15 = vsyncpa [#allocation7], 0 }
   0x3   :  { %16 = vsyncpa [#allocation5], 0 }
   0x4   :  { %18 = vsyncpa [#allocation5 + $0x1], 0  ;;  %s1337_s24 = smov 0   ;;  %s1339_s25 = smov 0  }
   0x5   :  { %s1341_s26 = smov 0   ;;  %s1343_s27 = smov 0  }
   0x6   :  { %s1345_s28 = smov 0   ;;  %s1347_s29 = smov 0  }
   0x7 LB: > { %1621 = sst [smem:[#allocation13_spill]] %s1269_s24  ;;  %s876_s30 = sadd.s32 4294967295, %s1289_s29   ;;  %s1289_s29 = sphi %s1347_s29, %s24_s29   ;;  %s1285_s28 = sphi %s1345_s28, %s1642_s28   ;;  %s1281_s27 = sphi %s1343_s27, %s1641_s27   ;;  %s1277_s26 = sphi %s1341_s26, %s1640_s26   ;;  %s1273_s25 = sphi %s1339_s25, %s1639_s25   ;;  %s1269_s24 = sphi %s1337_s24, %s1638_s24  }
   0x8   : > { %s877_s8 = sadd.s32 4294967294, %s1289_s29   ;;  %p56_p0 = scmp.ne.s32.totalorder %s1273_s25, %s1269_s24 }
   0x9   : > { %p1371_p1 = scmp.eq.s32.totalorder %s876_s30, 0  ;;  %p1375_p2 = scmp.eq.s32.totalorder %s876_s30, 1 }
   0xa   : > { %p227_p3 = scmp.eq.s32.totalorder %s877_s8, 1  ;;  %p878_p5 = scmp.ge.s32.totalorder %s1289_s29, 1 }
   0xb   : > { %s1622_s9 = scalar_select %p1371_p1, 1, 0 }
   0xc   : > { %p1381_p4 = por %p1371_p1, %p56_p0  ;;  %p1386_p6 = por %p227_p3, %p56_p0 }
   0xd   : > { %p234_p7 = scmp.lt.s32.totalorder %s1289_s29, 3  ;;  %s1291_s14 = smov [#allocation6]  }
   0xe   : > { %s1624_s11 = scalar_select %p1381_p4, 1, 0 }
   0xf   : > { %s1625_s12 = scalar_select %p1386_p6, 1, 0 }
  0x10   : > { %p1391_p8 = pnand %p878_p5, %p234_p7  ;;  %s249_s15 = sshll.u32 %s1291_s14, 4  ;;  %s1395_s15 = int_to_ptr.vmem [resolvable:$true] %s249_s15 }
  0x11   : > { %1626 = sst [smem:[#allocation14_spill]] %s1625_s12  ;;  %s1292_s17 = smov [#allocation8]  }
  0x12   : > { %p1038_p9 = pneg %p1391_p8  ;;  %s274_s18 = sshll.u32 %s1292_s17, 4  ;;  %s1406_s18 = int_to_ptr.vmem [resolvable:$true] %s274_s18 }
  0x13   : > { %s1117_s21 = scalar_lea.hbm %s1608_s1, 8192 }
  0x14   : > { %p1402_p11 = pnand %p1038_p9, %p1371_p1  ;;  %p1118_p12 = scmp.ne.s32.totalorder %s1608_s1, %s1117_s21 }
  0x15   : > { %p1124_p5 = scmp.lt.u32.totalorder %s1117_s21, %s1608_s1 }
  0x16   : > { %p1119_p13 = pneg %p1402_p11 }
  0x18   : > { %p1120_p0 = pnand %p1119_p13, %p1118_p12 }
  0x1a   : > { %p1121_p3 = pneg %p1120_p0 }
  0x1c   : > { %p1126_p7 = pnand %p1124_p5, %p1121_p3 }
  0x1e   : > { %1129 = shalt.err (!%p1126_p7)
}
  0x1f   : > { %s1130_s14 = scalar_lea.vmem %s1395_s15, 8192  ;;  %p1138_p1 = scmp.lt.s32.totalorder %s1395_s15, %s1395_s15 }
  0x20   : > { %p1131_p9 = scmp.ne.s32.totalorder %s1395_s15, %s1130_s14  ;;  %p1139_p12 = scmp.lt.s32.totalorder %s1130_s14, %s1130_s14 }
  0x22   : > { %p1133_p10 = pnand %p1131_p9, %p1119_p13  ;;  %p1140_p0 = por %p1139_p12, %p1138_p1 }
  0x24   : > { %p1134_p6 = pneg %p1133_p10 }
  0x26   : > { %p1141_p4 = pnand %p1140_p0, %p1134_p6 }
  0x28   : > { %1144 = shalt.err (!%p1141_p4)
}
  0x29   : > { %s1293_s17 = smov 256   ;;  %s1294_s19 = smov 16  }
  0x2a   : > { %1041 = dma.hbm_to_vmem [thread:$0]  (!%p1402_p11), %s1608_s1, 8192, %s1395_s15, [#allocation7], %s1293_s17, %s1293_s17, %s1294_s19  }
  0x2b   : > { %s1145_s30 = scalar_lea.hbm %s1610_s3, 8192 }
  0x2c   : > { %p1146_p1 = scmp.ne.s32.totalorder %s1610_s3, %s1145_s30  ;;  %p1152_p10 = scmp.lt.u32.totalorder %s1145_s30, %s1610_s3 }
  0x2e   : > { %p1148_p4 = pnand %p1146_p1, %p1119_p13 }
  0x30   : > { %p1149_p6 = pneg %p1148_p4 }
  0x32   : > { %p1154_p3 = pnand %p1152_p10, %p1149_p6 }
  0x34   : > { %1157 = shalt.err (!%p1154_p3)
}
  0x35   : > { %s1158_s15 = scalar_lea.vmem %s1406_s18, 8192  ;;  %p1166_p12 = scmp.lt.s32.totalorder %s1406_s18, %s1406_s18 }
  0x36   : > { %p1159_p5 = scmp.ne.s32.totalorder %s1406_s18, %s1158_s15  ;;  %p1167_p0 = scmp.lt.s32.totalorder %s1158_s15, %s1158_s15 }
  0x38   : > { %p1161_p7 = pnand %p1159_p5, %p1119_p13  ;;  %p1168_p1 = por %p1167_p0, %p1166_p12 }
  0x3a   : > { %p1162_p9 = pneg %p1161_p7 }
  0x3c   : > { %p1169_p4 = pnand %p1168_p1, %p1162_p9 }
  0x3e   : > { %1172 = shalt.err (!%p1169_p4)
}
  0x3f   : > { %1044 = dma.hbm_to_vmem [thread:$0]  (!%p1402_p11), %s1610_s3, 8192, %s1406_s18, [#allocation7], %s1293_s17, %s1293_s17, %s1294_s19  }
  0x40   : > { %s36_s20 = sadd.s32 1, %s1285_s28  ;;  %s43_s21 = sadd.s32 1, %s1277_s26 }
  0x41   : > { %p38_p13 = scmp.ge.s32.totalorder %s36_s20, 2  ;;  %p50_p6 = scmp.ne.s32.totalorder %s1277_s26, %s1273_s25 }
  0x42   : > { %p51_p10 = scmp.eq.s32.totalorder %s1289_s29, 0  ;;  %p1055_p3 = scmp.lt.s32.totalorder %s1289_s29, 2 }
  0x43   : > { %s1644_s20 = smov (%p38_p13, %s36_s20), 0  ;;  %p1470_p7 = por %p1375_p2, %p50_p6 }
  0x44   : > { %p52_p5 = por %p51_p10, %p50_p6  ;;  %s40_s22 = ssub.s32 %s1285_s28, %s1644_s20 }
  0x45   : > { %s1629_s16 = scalar_select %p1470_p7, 1, 0 }
  0x46   : > { %s297_s23 = sand.u32 1, %s1277_s26   ;;  %p41_p9 = scmp.eq.s32.totalorder %s40_s22, 0 }
  0x47   : > { %s883_s18 = sshll.u32 %s297_s23, 4  ;;  %s896_s17 = sshll.u32 %s1285_s28, 8 }
  0x48   : > { %s1479_s19 = scalar_select %p41_p9, %s1277_s26, %s43_s21  }
  0x49   : > { %s1484_s14 = scalar_lea.hbm %s1607_s0, %s896_s17  ;;  %s301_s10 = scalar_lea.vmem [#allocation3], %s883_s18 }
  0x4a   : > { %s309_s15 = sshll.u32 %s301_s10, 4  ;;  %p1488_p2 = pnand %p1055_p3, %p52_p5  ;;  %s1492_s15 = int_to_ptr.vmem [resolvable:$true] %s309_s15 }
  0x4b   : > { %s298_s12 = scalar_lea.sflag [#allocation4], %s297_s23  ;;  %s1173_s21 = scalar_lea.hbm %s1484_s14, 256 }
  0x4c   : > { %p1174_p11 = scmp.ne.s32.totalorder %s1484_s14, %s1173_s21  ;;  %p1175_p12 = pneg %p1488_p2 }
  0x4d   : > { %s1178_s17 = scalar_lea.hbm %s1607_s0, 512  ;;  %p1179_p4 = scmp.lt.u32.totalorder %s1484_s14, %s1607_s0 }
  0x4e   : > { %p1176_p0 = pnand %p1175_p12, %p1174_p11  ;;  %p1180_p13 = scmp.lt.u32.totalorder %s1178_s17, %s1173_s21 }
  0x4f   : > { %p1182_p10 = scmp.lt.u32.totalorder %s1173_s21, %s1484_s14 }
  0x50   : > { %p1177_p1 = pneg %p1176_p0  ;;  %p1181_p6 = por %p1180_p13, %p1179_p4 }
  0x52   : > { %p1183_p3 = por %p1182_p10, %p1181_p6 }
  0x54   : > { %p1184_p5 = pnand %p1183_p3, %p1177_p1 }
  0x56   : > { %1187 = shalt.err (!%p1184_p5)
}
  0x57   : > { %s1188_s23 = scalar_lea.vmem %s1492_s15, 256  ;;  %s1295_s10 = smov [#allocation3]  }
  0x58   : > { %p1189_p9 = scmp.ne.s32.totalorder %s1492_s15, %s1188_s23  ;;  %s1193_s22 = sshll.u32 %s1295_s10, 4  ;;  %s1194_s22 = int_to_ptr.vmem [resolvable:$false] %s1193_s22 }
  0x59   : > { %s1195_s18 = scalar_lea.vmem %s1194_s22, 512  ;;  %p1196_p7 = scmp.lt.s32.totalorder %s1492_s15, %s1194_s22 }
  0x5a   : > { %p1191_p11 = pnand %p1189_p9, %p1175_p12  ;;  %p1197_p4 = scmp.lt.s32.totalorder %s1195_s18, %s1188_s23 }
  0x5c   : > { %p1192_p0 = pneg %p1191_p11  ;;  %p1198_p13 = por %p1197_p4, %p1196_p7 }
  0x5e   : > { %p1199_p6 = pnand %p1198_p13, %p1192_p0 }
  0x60   : > { %1202 = shalt.err (!%p1199_p6)
}
  0x61   : > { %1048 = dma.hbm_to_vmem [thread:$0]  (!%p1488_p2), %s1484_s14, 256, %s1492_s15, %s298_s12  }
  0x62   : > { %318 = sbr.rel (%p1391_p8) target bundleno = 809 (0x329), region = 48  ;;  %s1522_s21 = sand.u32 (!%p1391_p8), 1, %s1273_s25  }
  0x63   : > { %s887_s17 = sshll.u32 (!%p1391_p8), %s1522_s21, 4  ;;  %s321_s30 = scalar_lea.sflag (!%p1391_p8), [#allocation4], %s1522_s21 }
  0x64   : > { %s1528_s8 = scalar_lea.vmem (!%p1391_p8), [#allocation3], %s887_s17  ;;  %p1631_p7 = scmp.ne.s32.totalorder (!%p1391_p8), %s1624_s11, 0 }
  0x69   : > { %1256 = dma.done.wait (%p1631_p7), %s321_s30, 256  }
  0x6a   : > { %1258 = vsyncadd (%p1631_p7), %s321_s30, 4294967040  ;;  %p1632_p2 = scmp.ne.s32.totalorder %s1622_s9, 0 }
  0x6c   : > { %1260 = dma.done.wait (%p1632_p2), [#allocation7], 16384  }
  0x6d   : > { %1262 = vsyncadd (%p1632_p2), [#allocation7], 4294950912  ;;  %v383_v0 = vld [vmem:[#allocation6 + $0x8] sm:$0xff]  ;;  %v385_v1 = vld [vmem:[#allocation6 + $0x18] sm:$0xff]  ;;  %s897_s10 = sshll.u32 %s1281_s27, 8  ;;  %s366_s22 = scalar_lea.vmem [#allocation9], %s887_s17 }
  0x6e   : > { %v382_v2 = vld [vmem:[#allocation6] sm:$0xff]  ;;  %v898_v3 = vpack.c.bf16 %v385_v1, %v383_v0  ;;  %v384_v4 = vld [vmem:[#allocation6 + $0x10] sm:$0xff]  ;;  %v387_v5 = vld [vmem:[#allocation6 + $0x28] sm:$0xff]  ;;  %s763_s18 = sshll.u32 %s366_s22, 4  ;;  %s1558_s9 = scalar_lea.hbm %s1614_s7, %s897_s10  ;;  %s1560_s18 = int_to_ptr.vmem [resolvable:$true] %s763_s18 }
  0x6f   : > { %v389_v6 = vld [vmem:[#allocation6 + $0x38] sm:$0xff]  ;;  %v900_v7 = vpack.c.bf16 %v384_v4, %v382_v2  ;;  %v386_v9 = vld [vmem:[#allocation6 + $0x20] sm:$0xff]  ;;  %v388_v10 = vld [vmem:[#allocation6 + $0x30] sm:$0xff]  ;;  %s749_s27 = scalar_lea.sflag [#allocation5], %s1522_s21  ;;  %s1203_s11 = scalar_lea.vmem %s1560_s18, 256 }
  0x70   : > { %v902_v8 = vpack.c.bf16 %v389_v6, %v387_v5  ;;  %v391_v11 = vld [vmem:[#allocation6 + $0x48] sm:$0xff]  ;;  %899 = vmatprep.subr.bf16.mxu0 %v898_v3  ;;  %v393_v12 = vld [vmem:[#allocation6 + $0x58] sm:$0xff]  ;;  %v904_v13 = vpack.c.bf16 %v388_v10, %v386_v9  ;;  %v390_v15 = vld [vmem:[#allocation6 + $0x40] sm:$0xff]  ;;  %p1204_p8 = scmp.ne.s32.totalorder %s1560_s18, %s1203_s11  ;;  %p1633_p12 = scmp.ne.s32.totalorder %s1629_s16, 0 }
  0x71   : > { %901 = vmatpush1.bf16.msra.mxu0 %v900_v7  ;;  %v906_v14 = vpack.c.bf16 %v393_v12, %v391_v11  ;;  %v392_v16 = vld [vmem:[#allocation6 + $0x50] sm:$0xff]  ;;  %v395_v17 = vld [vmem:[#allocation6 + $0x68] sm:$0xff]  ;;  %v397_v18 = vld [vmem:[#allocation6 + $0x78] sm:$0xff]  ;;  %s1296_s17 = smov [#allocation9]  }
  0x72   : > { %903 = vmatprep.subr.bf16.mxu0 %v902_v8  ;;  %v908_v19 = vpack.c.bf16 %v392_v16, %v390_v15  ;;  %v910_v20 = vpack.c.bf16 %v397_v18, %v395_v17  ;;  %v394_v21 = vld [vmem:[#allocation6 + $0x60] sm:$0xff]  ;;  %v396_v22 = vld [vmem:[#allocation6 + $0x70] sm:$0xff]  ;;  %v399_v23 = vld [vmem:[#allocation6 + $0x88] sm:$0xff]  ;;  %p1205_p1 = pnand %p1204_p8, %p1633_p12  ;;  %s1207_s13 = sshll.u32 %s1296_s17, 4  ;;  %s1208_s13 = int_to_ptr.vmem [resolvable:$false] %s1207_s13 }
  0x73   : > { %v401_v24 = vld [vmem:[#allocation6 + $0x98] sm:$0xff]  ;;  %v912_v25 = vpack.c.bf16 %v396_v22, %v394_v21  ;;  %v398_v27 = vld [vmem:[#allocation6 + $0x80] sm:$0xff]  ;;  %v400_v28 = vld [vmem:[#allocation6 + $0x90] sm:$0xff]  ;;  %s1209_s14 = scalar_lea.vmem %s1208_s13, 512  ;;  %p1210_p3 = scmp.lt.s32.totalorder %s1560_s18, %s1208_s13 }
  0x74   : > { %v914_v26 = vpack.c.bf16 %v401_v24, %v399_v23  ;;  %v403_v29 = vld [vmem:[#allocation6 + $0xa8] sm:$0xff]  ;;  %v405_v30 = vld [vmem:[#allocation6 + $0xb8] sm:$0xff]  ;;  %v916_v31 = vpack.c.bf16 %v400_v28, %v398_v27  ;;  %v402_v33 = vld [vmem:[#allocation6 + $0xa0] sm:$0xff]  ;;  %p1206_p10 = pneg %p1205_p1  ;;  %p1211_p5 = scmp.lt.s32.totalorder %s1209_s14, %s1203_s11 }
  0x75   : > { %905 = vmatpush1.bf16.msra.mxu0 %v904_v13  ;;  %v918_v32 = vpack.c.bf16 %v405_v30, %v403_v29  ;;  %v404_v34 = vld [vmem:[#allocation6 + $0xb0] sm:$0xff]  ;;  %v407_v35 = vld [vmem:[#allocation6 + $0xc8] sm:$0xff]  ;;  %v409_v36 = vld [vmem:[#allocation6 + $0xd8] sm:$0xff] }
  0x76   : > { %907 = vmatprep.subr.bf16.mxu0 %v906_v14  ;;  %v920_v37 = vpack.c.bf16 %v404_v34, %v402_v33  ;;  %v406_v38 = vld [vmem:[#allocation6 + $0xc0] sm:$0xff]  ;;  %v408_v39 = vld [vmem:[#allocation6 + $0xd0] sm:$0xff]  ;;  %v922_v40 = vpack.c.bf16 %v409_v36, %v407_v35  ;;  %v411_v41 = vld [vmem:[#allocation6 + $0xe8] sm:$0xff]  ;;  %p1212_p9 = por %p1211_p5, %p1210_p3 }
  0x77   : > { %v413_v42 = vld [vmem:[#allocation6 + $0xf8] sm:$0xff]  ;;  %v542_v44 = vld [vmem:[#allocation8 + $0x8] sm:$0xff]  ;;  %v541_v46 = vld [vmem:[#allocation8] sm:$0xff]  ;;  %v924_v51 = vpack.c.bf16 %v408_v39, %v406_v38 }
  0x78   : > { %v381_v43 = vld [vmem:[%s1528_s8 + $0x8] sm:$0xff]  ;;  %v543_v48 = vld [vmem:[#allocation8 + $0x10] sm:$0xff]  ;;  %v545_v54 = vld [vmem:[#allocation8 + $0x20] sm:$0xff]  ;;  %v926_v57 = vpack.c.bf16 %v413_v42, %v411_v41  ;;  %p1213_p11 = pnand %p1212_p9, %p1206_p10 }
  0x79   : > { %909 = vmatpush1.bf16.msra.mxu0 %v908_v19  ;;  %522 = vmatprep.mubr.f32.mxu0 %v381_v43  ;;  %v544_v45 = vld [vmem:[#allocation8 + $0x18] sm:$0xff]  ;;  %v546_v49 = vld [vmem:[#allocation8 + $0x28] sm:$0xff]  ;;  %v964_v52 = vpack.c.bf16 %v543_v48, %v541_v46  ;;  %v547_v55 = vld [vmem:[#allocation8 + $0x30] sm:$0xff] }
  0x7a   : > { %911 = vmatprep.subr.bf16.mxu0 %v910_v20  ;;  %v962_v47 = vpack.c.bf16 %v544_v45, %v542_v44  ;;  %v548_v50 = vld [vmem:[#allocation8 + $0x38] sm:$0xff]  ;;  %v550_v56 = vld [vmem:[#allocation8 + $0x48] sm:$0xff]  ;;  %v410_v58 = vld [vmem:[#allocation6 + $0xe0] sm:$0xff]  ;;  %v968_v63 = vpack.c.bf16 %v547_v55, %v545_v54 }
  0x7b   : > { %v966_v53 = vpack.c.bf16 %v548_v50, %v546_v49  ;;  %v412_v59 = vld [vmem:[#allocation6 + $0xf0] sm:$0xff]  ;;  %v552_v60 = vld [vmem:[#allocation8 + $0x58] sm:$0xff]  ;;  %v415_v61 = vld [vmem:[#allocation6 + $0x108] sm:$0xff] }
  0x7c   : > { %963 = vmatprep.subr.bf16.mxu1 %v962_v47  ;;  %v417_v62 = vld [vmem:[#allocation6 + $0x118] sm:$0xff]  ;;  %v970_v0 = vpack.c.bf16 %v552_v60, %v550_v56  ;;  %v549_v1 = vld [vmem:[#allocation8 + $0x40] sm:$0xff]  ;;  %v551_v2 = vld [vmem:[#allocation8 + $0x50] sm:$0xff]  ;;  %v928_v3 = vpack.c.bf16 %v412_v59, %v410_v58 }
  0x7d   : > { %913 = vmatpush1.bf16.msra.mxu0 %v912_v25  ;;  %965 = vmatpush1.bf16.msra.mxu1 %v964_v52  ;;  %v554_v4 = vld [vmem:[#allocation8 + $0x68] sm:$0xff]  ;;  %v556_v5 = vld [vmem:[#allocation8 + $0x78] sm:$0xff]  ;;  %v930_v6 = vpack.c.bf16 %v417_v62, %v415_v61  ;;  %v414_v7 = vld [vmem:[#allocation6 + $0x100] sm:$0xff]  ;;  %v972_v11 = vpack.c.bf16 %v551_v2, %v549_v1 }
  0x7e   : > { %915 = vmatprep.subr.bf16.mxu0 %v914_v26  ;;  %967 = vmatprep.subr.bf16.mxu1 %v966_v53  ;;  %v416_v8 = vld [vmem:[#allocation6 + $0x110] sm:$0xff]  ;;  %v419_v9 = vld [vmem:[#allocation6 + $0x128] sm:$0xff]  ;;  %v421_v10 = vld [vmem:[#allocation6 + $0x138] sm:$0xff]  ;;  %v974_v12 = vpack.c.bf16 %v556_v5, %v554_v4 }
  0x7f   : > { %v553_v13 = vld [vmem:[#allocation8 + $0x60] sm:$0xff]  ;;  %v555_v14 = vld [vmem:[#allocation8 + $0x70] sm:$0xff]  ;;  %v932_v15 = vpack.c.bf16 %v416_v8, %v414_v7  ;;  %v558_v16 = vld [vmem:[#allocation8 + $0x88] sm:$0xff]  ;;  %v934_v18 = vpack.c.bf16 %v421_v10, %v419_v9 }
  0x80   : > { %v560_v17 = vld [vmem:[#allocation8 + $0x98] sm:$0xff]  ;;  %v418_v19 = vld [vmem:[#allocation6 + $0x120] sm:$0xff]  ;;  %v420_v20 = vld [vmem:[#allocation6 + $0x130] sm:$0xff]  ;;  %v976_v23 = vpack.c.bf16 %v555_v14, %v553_v13 }
  0x81   : > { %917 = vmatpush1.bf16.msra.mxu0 %v916_v31  ;;  %969 = vmatpush1.bf16.msra.mxu1 %v968_v63  ;;  %v423_v21 = vld [vmem:[#allocation6 + $0x148] sm:$0xff]  ;;  %v425_v22 = vld [vmem:[#allocation6 + $0x158] sm:$0xff]  ;;  %v978_v24 = vpack.c.bf16 %v560_v17, %v558_v16  ;;  %v557_v25 = vld [vmem:[#allocation8 + $0x80] sm:$0xff]  ;;  %v936_v27 = vpack.c.bf16 %v420_v20, %v418_v19 }
  0x82   : > { %919 = vmatprep.subr.bf16.mxu0 %v918_v32  ;;  %971 = vmatprep.subr.bf16.mxu1 %v970_v0  ;;  %v559_v26 = vld [vmem:[#allocation8 + $0x90] sm:$0xff]  ;;  %v562_v28 = vld [vmem:[#allocation8 + $0xa8] sm:$0xff]  ;;  %v564_v29 = vld [vmem:[#allocation8 + $0xb8] sm:$0xff]  ;;  %v938_v30 = vpack.c.bf16 %v425_v22, %v423_v21 }
  0x83   : > { %v422_v31 = vld [vmem:[#allocation6 + $0x140] sm:$0xff]  ;;  %v424_v32 = vld [vmem:[#allocation6 + $0x150] sm:$0xff]  ;;  %v427_v33 = vld [vmem:[#allocation6 + $0x168] sm:$0xff]  ;;  %v980_v35 = vpack.c.bf16 %v559_v26, %v557_v25  ;;  %v982_v36 = vpack.c.bf16 %v564_v29, %v562_v28 }
  0x84   : > { %v429_v34 = vld [vmem:[#allocation6 + $0x178] sm:$0xff]  ;;  %v563_v38 = vld [vmem:[#allocation8 + $0xb0] sm:$0xff]  ;;  %v940_v39 = vpack.c.bf16 %v424_v32, %v422_v31  ;;  %v426_v43 = vld [vmem:[#allocation6 + $0x160] sm:$0xff] }
  0x85   : > { %921 = vmatpush1.bf16.msra.mxu0 %v920_v37  ;;  %973 = vmatpush1.bf16.msra.mxu1 %v972_v11  ;;  %v561_v37 = vld [vmem:[#allocation8 + $0xa0] sm:$0xff]  ;;  %v568_v41 = vld [vmem:[#allocation8 + $0xd8] sm:$0xff]  ;;  %v942_v42 = vpack.c.bf16 %v429_v34, %v427_v33  ;;  %v428_v44 = vld [vmem:[#allocation6 + $0x170] sm:$0xff] }
  0x86   : > { %923 = vmatprep.subr.bf16.mxu0 %v922_v40  ;;  %975 = vmatprep.subr.bf16.mxu1 %v974_v12  ;;  %v566_v40 = vld [vmem:[#allocation8 + $0xc8] sm:$0xff]  ;;  %v433_v46 = vld [vmem:[#allocation6 + $0x198] sm:$0xff]  ;;  %v984_v47 = vpack.c.bf16 %v563_v38, %v561_v37  ;;  %v565_v49 = vld [vmem:[#allocation8 + $0xc0] sm:$0xff] }
  0x87   : > { %v431_v45 = vld [vmem:[#allocation6 + $0x188] sm:$0xff]  ;;  %v986_v48 = vpack.c.bf16 %v568_v41, %v566_v40  ;;  %v567_v50 = vld [vmem:[#allocation8 + $0xd0] sm:$0xff]  ;;  %v572_v53 = vld [vmem:[#allocation8 + $0xf8] sm:$0xff] }
  0x88   : > { %v570_v52 = vld [vmem:[#allocation8 + $0xe8] sm:$0xff]  ;;  %v946_v54 = vpack.c.bf16 %v433_v46, %v431_v45  ;;  %v430_v55 = vld [vmem:[#allocation6 + $0x180] sm:$0xff]  ;;  %v432_v56 = vld [vmem:[#allocation6 + $0x190] sm:$0xff]  ;;  %v988_v59 = vpack.c.bf16 %v567_v50, %v565_v49 }
  0x89   : > { %925 = vmatpush1.bf16.msra.mxu0 %v924_v51  ;;  %977 = vmatpush1.bf16.msra.mxu1 %v976_v23  ;;  %v944_v51 = vpack.c.bf16 %v428_v44, %v426_v43  ;;  %v437_v58 = vld [vmem:[#allocation6 + $0x1b8] sm:$0xff]  ;;  %v990_v60 = vpack.c.bf16 %v572_v53, %v570_v52  ;;  %v569_v61 = vld [vmem:[#allocation8 + $0xe0] sm:$0xff]  ;;  %v571_v62 = vld [vmem:[#allocation8 + $0xf0] sm:$0xff]  ;;  %v948_v63 = vpack.c.bf16 %v432_v56, %v430_v55 }
  0x8a   : > { %927 = vmatprep.subr.bf16.mxu0 %v926_v57  ;;  %979 = vmatprep.subr.bf16.mxu1 %v978_v24  ;;  %v435_v57 = vld [vmem:[#allocation6 + $0x1a8] sm:$0xff]  ;;  %v576_v1 = vld [vmem:[#allocation8 + $0x118] sm:$0xff]  ;;  %v436_v4 = vld [vmem:[#allocation6 + $0x1b0] sm:$0xff]  ;;  %v992_v7 = vpack.c.bf16 %v571_v62, %v569_v61 }
  0x8b   : > { %v574_v0 = vld [vmem:[#allocation8 + $0x108] sm:$0xff]  ;;  %v950_v2 = vpack.c.bf16 %v437_v58, %v435_v57  ;;  %v573_v9 = vld [vmem:[#allocation8 + $0x100] sm:$0xff]  ;;  %v575_v10 = vld [vmem:[#allocation8 + $0x110] sm:$0xff] }
  0x8c   : > { %v439_v5 = vld [vmem:[#allocation6 + $0x1c8] sm:$0xff]  ;;  %v994_v8 = vpack.c.bf16 %v576_v1, %v574_v0  ;;  %v580_v13 = vld [vmem:[#allocation8 + $0x138] sm:$0xff]  ;;  %v440_v16 = vld [vmem:[#allocation6 + $0x1d0] sm:$0xff]  ;;  %v996_v19 = vpack.c.bf16 %v575_v10, %v573_v9 }
  0x8d   : > { %929 = vmatpush1.bf16.msra.mxu0 %v928_v3  ;;  %981 = vmatpush1.bf16.msra.mxu1 %v980_v35  ;;  %v434_v3 = vld [vmem:[#allocation6 + $0x1a0] sm:$0xff]  ;;  %v578_v12 = vld [vmem:[#allocation8 + $0x128] sm:$0xff]  ;;  %v579_v22 = vld [vmem:[#allocation8 + $0x130] sm:$0xff] }
  0x8e   : > { %931 = vmatprep.subr.bf16.mxu0 %v930_v6  ;;  %983 = vmatprep.subr.bf16.mxu1 %v982_v36  ;;  %v441_v6 = vld [vmem:[#allocation6 + $0x1d8] sm:$0xff]  ;;  %v952_v11 = vpack.c.bf16 %v436_v4, %v434_v3  ;;  %v443_v17 = vld [vmem:[#allocation6 + $0x1e8] sm:$0xff]  ;;  %v998_v20 = vpack.c.bf16 %v580_v13, %v578_v12  ;;  %v577_v21 = vld [vmem:[#allocation8 + $0x120] sm:$0xff] }
  0x8f   : > { %v954_v14 = vpack.c.bf16 %v441_v6, %v439_v5  ;;  %v582_v24 = vld [vmem:[#allocation8 + $0x148] sm:$0xff]  ;;  %v584_v25 = vld [vmem:[#allocation8 + $0x158] sm:$0xff]  ;;  %v444_v28 = vld [vmem:[#allocation6 + $0x1f0] sm:$0xff]  ;;  %v1000_v29 = vpack.c.bf16 %v579_v22, %v577_v21 }
  0x90   : > { %v581_v31 = vld [vmem:[#allocation8 + $0x140] sm:$0xff]  ;;  %v583_v32 = vld [vmem:[#allocation8 + $0x150] sm:$0xff]  ;;  %v586_v36 = vld [vmem:[#allocation8 + $0x168] sm:$0xff] }
  0x91   : > { %933 = vmatpush1.bf16.msra.mxu0 %v932_v15  ;;  %985 = vmatpush1.bf16.msra.mxu1 %v984_v47  ;;  %v438_v15 = vld [vmem:[#allocation6 + $0x1c0] sm:$0xff]  ;;  %v1004_v34 = vpack.c.bf16 %v583_v32, %v581_v31  ;;  %v588_v37 = vld [vmem:[#allocation8 + $0x178] sm:$0xff]  ;;  %v587_v40 = vld [vmem:[#allocation8 + $0x170] sm:$0xff] }
  0x92   : > { %935 = vmatprep.subr.bf16.mxu0 %v934_v18  ;;  %987 = vmatprep.subr.bf16.mxu1 %v986_v48  ;;  %v445_v18 = vld [vmem:[#allocation6 + $0x1f8] sm:$0xff]  ;;  %v956_v23 = vpack.c.bf16 %v440_v16, %v438_v15  ;;  %v380_v35 = vld [vmem:[%s1528_s8] sm:$0xff]  ;;  %v1006_v38 = vpack.c.bf16 %v588_v37, %v586_v36  ;;  %v594_v48 = vld [vmem:[#allocation8 + $0x1a8] sm:$0xff] }
  0x93   : > { %v958_v26 = vpack.c.bf16 %v445_v18, %v443_v17  ;;  %v592_v43 = vld [vmem:[#allocation8 + $0x198] sm:$0xff]  ;;  %v589_v45 = vld [vmem:[#allocation8 + $0x180] sm:$0xff]  ;;  %v591_v46 = vld [vmem:[#allocation8 + $0x190] sm:$0xff] }
  0x94   : > { %v1012_v47 = vpack.c.bf16 %v591_v46, %v589_v45  ;;  %v596_v49 = vld [vmem:[#allocation8 + $0x1b8] sm:$0xff]  ;;  %v595_v52 = vld [vmem:[#allocation8 + $0x1b0] sm:$0xff]  ;;  %v597_v57 = vld [vmem:[#allocation8 + $0x1c0] sm:$0xff] }
  0x95   : > { %937 = vmatpush1.bf16.msra.mxu0 %v936_v27  ;;  %989 = vmatpush1.bf16.msra.mxu1 %v988_v59  ;;  %v442_v27 = vld [vmem:[#allocation6 + $0x1e0] sm:$0xff]  ;;  %v1014_v50 = vpack.c.bf16 %v596_v49, %v594_v48  ;;  %v600_v55 = vld [vmem:[#allocation8 + $0x1d8] sm:$0xff]  ;;  %v599_v58 = vld [vmem:[#allocation8 + $0x1d0] sm:$0xff] }
  0x96   : > { %939 = vmatprep.subr.bf16.mxu0 %v938_v30  ;;  %991 = vmatprep.subr.bf16.mxu1 %v990_v60  ;;  %v1002_v30 = vpack.c.bf16 %v584_v25, %v582_v24  ;;  %v960_v33 = vpack.c.bf16 %v444_v28, %v442_v27  ;;  %v1020_v59 = vpack.c.bf16 %v599_v58, %v597_v57  ;;  %v602_v60 = vld [vmem:[#allocation8 + $0x1e8] sm:$0xff]  ;;  %v604_v61 = vld [vmem:[#allocation8 + $0x1f8] sm:$0xff]  ;;  %v603_v0 = vld [vmem:[#allocation8 + $0x1f0] sm:$0xff] }
  0x97   : > { %v1022_v62 = vpack.c.bf16 %v604_v61, %v602_v60  ;;  %v446_v5 = vld [vmem:[%s1609_s2] sm:$0x3] }
  0x99   : > { %941 = vmatpush1.bf16.msra.mxu0 %v940_v39  ;;  %993 = vmatpush1.bf16.msra.mxu1 %v992_v7  ;;  %v585_v39 = vld [vmem:[#allocation8 + $0x160] sm:$0xff] }
  0x9a   : > { %943 = vmatprep.subr.bf16.mxu0 %v942_v42  ;;  %995 = vmatprep.subr.bf16.mxu1 %v994_v8  ;;  %v1008_v41 = vpack.c.bf16 %v587_v40, %v585_v39  ;;  %v590_v42 = vld [vmem:[#allocation8 + $0x188] sm:$0xff] }
  0x9b   : > { %v1010_v44 = vpack.c.bf16 %v592_v43, %v590_v42  ;;  %v732_v42 = vld [vmem:[%s1613_s6] sm:$0x3] }
  0x9d   : > { %945 = vmatpush1.bf16.msra.mxu0 %v944_v51  ;;  %997 = vmatpush1.bf16.msra.mxu1 %v996_v19  ;;  %v593_v51 = vld [vmem:[#allocation8 + $0x1a0] sm:$0xff] }
  0x9e   : > { %947 = vmatprep.subr.bf16.mxu0 %v946_v54  ;;  %999 = vmatprep.subr.bf16.mxu1 %v998_v20  ;;  %v1016_v53 = vpack.c.bf16 %v595_v52, %v593_v51  ;;  %v598_v54 = vld [vmem:[#allocation8 + $0x1c8] sm:$0xff] }
  0x9f   : > { %v1018_v56 = vpack.c.bf16 %v600_v55, %v598_v54 }
  0xa1   : > { %949 = vmatpush1.bf16.msra.mxu0 %v948_v63  ;;  %1001 = vmatpush1.bf16.msra.mxu1 %v1000_v29  ;;  %v601_v63 = vld [vmem:[#allocation8 + $0x1e0] sm:$0xff] }
  0xa2   : > { %951 = vmatprep.subr.bf16.mxu0 %v950_v2  ;;  %1003 = vmatprep.subr.bf16.mxu1 %v1002_v30  ;;  %v1024_v1 = vpack.c.bf16 %v603_v0, %v601_v63  ;;  %v448_v2 = vlaneseq }
  0xa4   : > { %v449_v3 = vshrl.u32 %v448_v2, 7 }
  0xa5   : > { %953 = vmatpush1.bf16.msra.mxu0 %v952_v11  ;;  %1005 = vmatpush1.bf16.msra.mxu1 %v1004_v34 }
  0xa6   : > { %955 = vmatprep.subr.bf16.mxu0 %v954_v14  ;;  %1007 = vmatprep.subr.bf16.mxu1 %v1006_v38  ;;  %v450_v4 = vsub.s32 0, %v449_v3  ;;  %v454_v6 = vsub.s32 1, %v449_v3 }
  0xa8   : > { %v451_v7 = vrot.slane %v446_v5, %v450_v4  ;;  %v455_v8 = vrot.slane %v446_v5, %v454_v6  ;;  %v741_v51 = vrot.slane %v732_v42, %v454_v6 }
  0xa9   : > { %957 = vmatpush1.bf16.msra.mxu0 %v956_v23  ;;  %1009 = vmatpush1.bf16.msra.mxu1 %v1008_v41  ;;  %v685_v23 = vld [vmem:[%s1611_s4] sm:$0x3] }
  0xaa   : > { %959 = vmatprep.subr.bf16.mxu0 %v958_v26  ;;  %1011 = vmatprep.subr.bf16.mxu1 %v1010_v44  ;;  %v690_v24 = vrot.slane %v685_v23, %v450_v4  ;;  %v694_v25 = vrot.slane %v685_v23, %v454_v6  ;;  %v718_v41 = vld [vmem:[%s1612_s5] sm:$0x3] }
  0xab   : > { %v723_v45 = vrot.slane %v718_v41, %v450_v4  ;;  %v727_v46 = vrot.slane %v718_v41, %v454_v6 }
  0xad   : > { %961 = vmatpush1.bf16.msra.mxu0 %v960_v33  ;;  %1013 = vmatpush1.bf16.msra.mxu1 %v1012_v47 }
  0xae   : > { %1015 = vmatprep.subr.bf16.mxu1 %v1014_v50  ;;  %v737_v50 = vrot.slane %v732_v42, %v450_v4 }
  0xb0   : > { %523 = vmatmul.mubr.f32.vlgmr.msra.gmra.mrb[0].mxu0 %v380_v35 }
  0xb1   : > { %1017 = vmatpush1.bf16.msra.mxu1 %v1016_v53 }
  0xb2   : > { %1019 = vmatprep.subr.bf16.mxu1 %v1018_v56 }
  0xb5   : > { %1021 = vmatpush1.bf16.msra.mxu1 %v1020_v59 }
  0xb6   : > { %1023 = vmatprep.subr.bf16.mxu1 %v1022_v62 }
  0xb9   : > { %1025 = vmatpush1.bf16.msra.mxu1 %v1024_v1 }
 0x183   : > { %v524_v9 = vpop.f32.mrb[0].mxu0 }
 0x184   : > { %v525_v10 = vadd.f32 %v524_v9, %v451_v7  ;;  %v526_v11 = vpop.f32.mrb[1].mxu0 }
 0x185   : > { %v527_v12 = vadd.f32 %v526_v11, %v455_v8 }
 0x186   : > { %v531_v13 = vmul.f32 0.70710677, %v525_v10  ;;  %v529_v20 = vmul.f32 0.5, %v525_v10 }
 0x187   : > { %v532_v14 = vmul.f32 0.70710677, %v527_v12  ;;  %v530_v18 = vmul.f32 0.5, %v527_v12 }
 0x188   : > { %1111 = verf.f32 %v531_v13 }
 0x189   : > { %1113 = verf.f32 %v532_v14 }
 0x192   : > { %v1112_v15 = vpop.eup %1111 }
 0x193   : > { %v1114_v16 = vpop.eup %1113  ;;  %v535_v17 = vadd.f32 1.0, %v1112_v15 }
 0x194   : > { %v536_v19 = vadd.f32 1.0, %v1114_v16 }
 0x195   : > { %v537_v22 = vmul.f32 %v535_v17, %v529_v20 }
 0x196   : > { %v538_v21 = vmul.f32 %v536_v19, %v530_v18 }
 0x198   : > { %669 = vmatprep.mubr.f32.mxu1 %v538_v21 }
 0x199   : > { %670 = vmatmul.mubr.f32.vlgmr.msra.gmra.mrb[0].mxu1 %v537_v22 }
 0x26c   : > { %v671_v26 = vpop.f32.mrb[0].mxu1 }
 0x26d   : > { %v697_v27 = vadd.f32 %v690_v24, %v671_v26  ;;  %v673_v28 = vpop.f32.mrb[1].mxu1 }
 0x26e   : > { %v698_v29 = vadd.f32 %v694_v25, %v673_v28 }
 0x26f   : > { %v704_v31 = vmul.f32 %v697_v27, %v697_v27 }
 0x270   : > { %v699_v30 = vadd.f32 %v698_v29, %v697_v27  ;;  %v705_v32 = vmul.f32 %v698_v29, %v698_v29 }
 0x272   : > { %700 = vadd.xlane.f32.xlu0 %v699_v30  ;;  %v706_v33 = vadd.f32 %v705_v32, %v704_v31 }
 0x276   : > { %707 = vadd.xlane.f32.xlu0 %v706_v33 }
 0x2ff   : > { %v701_v34 = vpop.xlane.xlu0 %700 }
 0x300   : > { %v703_v35 = vmul.f32 0.00390625, %v701_v34 }
 0x302   : > { %v710_v37 = vmul.f32 %v703_v35, %v703_v35  ;;  %v712_v43 = vsub.f32 %v697_v27, %v703_v35  ;;  %v713_v44 = vsub.f32 %v698_v29, %v703_v35 }
 0x303   : > { %v708_v36 = vpop.xlane.xlu0 %707 }
 0x304   : > { %v709_v38 = vmul.f32 0.00390625, %v708_v36 }
 0x306   : > { %v711_v39 = vsub.f32 %v709_v38, %v710_v37 }
 0x308   : > { %v714_v40 = vadd.f32 1e-05, %v711_v39 }
 0x30a   : > { %1115 = vrsqrt.f32 %v714_v40 }
 0x314   : > { %v1116_v47 = vpop.eup %1115 }
 0x315   : > { %v716_v48 = vmul.f32 %v1116_v47, %v712_v43  ;;  %v717_v49 = vmul.f32 %v1116_v47, %v713_v44 }
 0x317   : > { %v730_v52 = vmul.f32 %v723_v45, %v716_v48  ;;  %v731_v53 = vmul.f32 %v727_v46, %v717_v49 }
 0x319   : > { %v744_v54 = vadd.f32 %v737_v50, %v730_v52  ;;  %v745_v55 = vadd.f32 %v741_v51, %v731_v53 }
 0x31b   : > { %746 = vst [vmem:[%s366_s22] sm:$0xff] %v744_v54  ;;  %747 = vst [vmem:[%s366_s22 + $0x8] sm:$0xff] %v745_v55 }
 0x31c   : > { %1216 = shalt.err (!%p1213_p11)
}
 0x31d   : > { %s1217_s21 = scalar_lea.hbm %s1558_s9, 256  ;;  %s1221_s12 = scalar_lea.hbm %s1614_s7, 512 }
 0x31e   : > { %p1218_p0 = scmp.ne.s32.totalorder %s1558_s9, %s1217_s21  ;;  %p1222_p6 = scmp.lt.u32.totalorder %s1558_s9, %s1614_s7 }
 0x31f   : > { %p1223_p7 = scmp.lt.u32.totalorder %s1221_s12, %s1217_s21  ;;  %p1225_p8 = scmp.lt.u32.totalorder %s1217_s21, %s1558_s9 }
 0x320   : > { %p1219_p4 = pnand %p1218_p0, %p1633_p12 }
 0x321   : > { %p1224_p2 = por %p1223_p7, %p1222_p6 }
 0x322   : > { %p1220_p13 = pneg %p1219_p4 }
 0x323   : > { %p1226_p1 = por %p1225_p8, %p1224_p2 }
 0x325   : > { %p1227_p10 = pnand %p1226_p1, %p1220_p13 }
 0x327   : > { %1230 = shalt.err (!%p1227_p10)
}
 0x328   : > { %1036 = dma.vmem_to_hbm [thread:$0]  (%p1633_p12), %s1560_s18, 256, %s1558_s9, %s749_s27  }
 0x329 PF: > { %s1634_s22 = sld [smem:[#allocation13_spill]]  ;;  %s1635_s30 = sld [smem:[#allocation14_spill]] }
 0x32a   : > { %p1637_p5 = scmp.ge.s32.totalorder %s1289_s29, 2 }
 0x32f   : > { %s775_s8 = sand.u32 1, %s1634_s22   ;;  %p1636_p3 = scmp.ne.s32.totalorder %s1635_s30, 0 }
 0x330   : > { %s776_s11 = scalar_lea.sflag [#allocation5], %s775_s8 }
 0x331   : > { %p1050_p9 = pnand %p1637_p5, %p1636_p3 }
 0x333   : > { %1264 = dma.done.wait (!%p1050_p9), %s776_s11, 256  }
 0x334   : > { %1266 = vsyncadd (!%p1050_p9), %s776_s11, 4294967040  ;;  %s24_s29 = sadd.s32 1, %s1289_s29   ;;  %s1638_s24 = smov %s1273_s25 }
 0x335   : > { %p21_p11 = scmp.ge.s32.totalorder %s24_s29, 4   ;;  %s1639_s25 = smov %s1277_s26 }
 0x336   : > { %s1640_s26 = smov %s1479_s19  ;;  %s1641_s27 = smov %s1285_s28 }
 0x337   : > { %s1642_s28 = smov %s1644_s20  ;;  %23 = sbr.rel (!%p21_p11) target bundleno = 7 (0x7), region = 114 }
 0x33e   :  { %781 = vsyncpa [#allocation4], 1 }
 0x33f   :  { %783 = vsyncpa [#allocation4 + $0x1], 1 }
 0x340   :  { %784 = vsyncpa [#allocation7], 1 }
 0x341   :  { %785 = vsyncpa [#allocation5], 1 }
 0x342   :  { %787 = vsyncpa [#allocation5 + $0x1], 1 }

// kernel: tpu_custom_call.1
= control target key start
LH: loop header
LB: loop body
LE: loop exit
PB: predicated region body
PF: predicated region fallthrough
CT: control target
= control target key end

     0   :  { %12 = vsyncpa [#allocation4], 0  ;;  %s1607_s0 = inlined_call_operand.hbm [shape: f32[16,256], index: 0, kind: input, shape index: {}]   ;;  %s1608_s1 = inlined_call_operand.hbm [shape: f32[256,256], index: 1, kind: input, shape index: {}]   ;;  %s1609_s2 = inlined_call_operand.vmem [shape: f32[1,256], index: 2, kind: input, shape index: {}]   ;;  %s1610_s3 = inlined_call_operand.hbm [shape: f32[256,256], index: 3, kind: input, shape index: {}]   ;;  %s1611_s4 = inlined_call_operand.vmem [shape: f32[1,256], index: 4, kind: input, shape index: {}]   ;;  %s1612_s5 = inlined_call_operand.vmem [shape: f32[1,256], index: 5, kind: input, shape index: {}]   ;;  %s1613_s6 = inlined_call_operand.vmem [shape: f32[1,256], index: 6, kind: input, shape index: {}]   ;;  %s1614_s7 = inlined_call_operand.hbm [shape: f32[16,256], index: 7, kind: output, shape index: {}]  }
   0x1   :  { %14 = vsyncpa [#allocation4 + $0x1], 0 }
   0x2   :  { %15 = vsyncpa [#allocation7], 0 }
   0x3   :  { %16 = vsyncpa [#allocation5], 0 }
   0x4   :  { %18 = vsyncpa [#allocation5 + $0x1], 0  ;;  %s1337_s24 = smov 0   ;;  %s1339_s25 = smov 0  }
   0x5   :  { %s1341_s26 = smov 0   ;;  %s1343_s27 = smov 0  }
   0x6   :  { %s1345_s28 = smov 0   ;;  %s1347_s29 = smov 0  }
   0x7 LB: > { %1621 = sst [smem:[#allocation13_spill]] %s1269_s24  ;;  %s876_s30 = sadd.s32 4294967295, %s1289_s29   ;;  %s1289_s29 = sphi %s1347_s29, %s24_s29   ;;  %s1285_s28 = sphi %s1345_s28, %s1642_s28   ;;  %s1281_s27 = sphi %s1343_s27, %s1641_s27   ;;  %s1277_s26 = sphi %s1341_s26, %s1640_s26   ;;  %s1273_s25 = sphi %s1339_s25, %s1639_s25   ;;  %s1269_s24 = sphi %s1337_s24, %s1638_s24  }
   0x8   : > { %s877_s8 = sadd.s32 4294967294, %s1289_s29   ;;  %p56_p0 = scmp.ne.s32.totalorder %s1273_s25, %s1269_s24 }
   0x9   : > { %p1371_p1 = scmp.eq.s32.totalorder %s876_s30, 0  ;;  %p1375_p2 = scmp.eq.s32.totalorder %s876_s30, 1 }
   0xa   : > { %p227_p3 = scmp.eq.s32.totalorder %s877_s8, 1  ;;  %p878_p5 = scmp.ge.s32.totalorder %s1289_s29, 1 }
   0xb   : > { %s1622_s9 = scalar_select %p1371_p1, 1, 0 }
   0xc   : > { %p1381_p4 = por %p1371_p1, %p56_p0  ;;  %p1386_p6 = por %p227_p3, %p56_p0 }
   0xd   : > { %p234_p7 = scmp.lt.s32.totalorder %s1289_s29, 3  ;;  %s1291_s14 = smov [#allocation6]  }
   0xe   : > { %s1624_s11 = scalar_select %p1381_p4, 1, 0 }
   0xf   : > { %s1625_s12 = scalar_select %p1386_p6, 1, 0 }
  0x10   : > { %p1391_p8 = pnand %p878_p5, %p234_p7  ;;  %s249_s15 = sshll.u32 %s1291_s14, 4  ;;  %s1395_s15 = int_to_ptr.vmem [resolvable:$true] %s249_s15 }
  0x11   : > { %1626 = sst [smem:[#allocation14_spill]] %s1625_s12  ;;  %s1292_s17 = smov [#allocation8]  }
  0x12   : > { %p1038_p9 = pneg %p1391_p8  ;;  %s274_s18 = sshll.u32 %s1292_s17, 4  ;;  %s1406_s18 = int_to_ptr.vmem [resolvable:$true] %s274_s18 }
  0x13   : > { %s1117_s21 = scalar_lea.hbm %s1608_s1, 8192 }
  0x14   : > { %p1402_p11 = pnand %p1038_p9, %p1371_p1  ;;  %p1118_p12 = scmp.ne.s32.totalorder %s1608_s1, %s1117_s21 }
  0x15   : > { %p1124_p5 = scmp.lt.u32.totalorder %s1117_s21, %s1608_s1 }
  0x16   : > { %p1119_p13 = pneg %p1402_p11 }
  0x18   : > { %p1120_p0 = pnand %p1119_p13, %p1118_p12 }
  0x1a   : > { %p1121_p3 = pneg %p1120_p0 }
  0x1c   : > { %p1126_p7 = pnand %p1124_p5, %p1121_p3 }
  0x1e   : > { %1129 = shalt.err (!%p1126_p7)
}
  0x1f   : > { %s1130_s14 = scalar_lea.vmem %s1395_s15, 8192  ;;  %p1138_p1 = scmp.lt.s32.totalorder %s1395_s15, %s1395_s15 }
  0x20   : > { %p1131_p9 = scmp.ne.s32.totalorder %s1395_s15, %s1130_s14  ;;  %p1139_p12 = scmp.lt.s32.totalorder %s1130_s14, %s1130_s14 }
  0x22   : > { %p1133_p10 = pnand %p1131_p9, %p1119_p13  ;;  %p1140_p0 = por %p1139_p12, %p1138_p1 }
  0x24   : > { %p1134_p6 = pneg %p1133_p10 }
  0x26   : > { %p1141_p4 = pnand %p1140_p0, %p1134_p6 }
  0x28   : > { %1144 = shalt.err (!%p1141_p4)
}
  0x29   : > { %s1293_s17 = smov 256   ;;  %s1294_s19 = smov 16  }
  0x2a   : > { %1041 = dma.hbm_to_vmem [thread:$0]  (!%p1402_p11), %s1608_s1, 8192, %s1395_s15, [#allocation7], %s1293_s17, %s1293_s17, %s1294_s19  }
  0x2b   : > { %s1145_s30 = scalar_lea.hbm %s1610_s3, 8192 }
  0x2c   : > { %p1146_p1 = scmp.ne.s32.totalorder %s1610_s3, %s1145_s30  ;;  %p1152_p10 = scmp.lt.u32.totalorder %s1145_s30, %s1610_s3 }
  0x2e   : > { %p1148_p4 = pnand %p1146_p1, %p1119_p13 }
  0x30   : > { %p1149_p6 = pneg %p1148_p4 }
  0x32   : > { %p1154_p3 = pnand %p1152_p10, %p1149_p6 }
  0x34   : > { %1157 = shalt.err (!%p1154_p3)
}
  0x35   : > { %s1158_s15 = scalar_lea.vmem %s1406_s18, 8192  ;;  %p1166_p12 = scmp.lt.s32.totalorder %s1406_s18, %s1406_s18 }
  0x36   : > { %p1159_p5 = scmp.ne.s32.totalorder %s1406_s18, %s1158_s15  ;;  %p1167_p0 = scmp.lt.s32.totalorder %s1158_s15, %s1158_s15 }
  0x38   : > { %p1161_p7 = pnand %p1159_p5, %p1119_p13  ;;  %p1168_p1 = por %p1167_p0, %p1166_p12 }
  0x3a   : > { %p1162_p9 = pneg %p1161_p7 }
  0x3c   : > { %p1169_p4 = pnand %p1168_p1, %p1162_p9 }
  0x3e   : > { %1172 = shalt.err (!%p1169_p4)
}
  0x3f   : > { %1044 = dma.hbm_to_vmem [thread:$0]  (!%p1402_p11), %s1610_s3, 8192, %s1406_s18, [#allocation7], %s1293_s17, %s1293_s17, %s1294_s19  }
  0x40   : > { %s36_s20 = sadd.s32 1, %s1285_s28  ;;  %s43_s21 = sadd.s32 1, %s1277_s26 }
  0x41   : > { %p38_p13 = scmp.ge.s32.totalorder %s36_s20, 2  ;;  %p50_p6 = scmp.ne.s32.totalorder %s1277_s26, %s1273_s25 }
  0x42   : > { %p51_p10 = scmp.eq.s32.totalorder %s1289_s29, 0  ;;  %p1055_p3 = scmp.lt.s32.totalorder %s1289_s29, 2 }
  0x43   : > { %s1644_s20 = smov (%p38_p13, %s36_s20), 0  ;;  %p1470_p7 = por %p1375_p2, %p50_p6 }
  0x44   : > { %p52_p5 = por %p51_p10, %p50_p6  ;;  %s40_s22 = ssub.s32 %s1285_s28, %s1644_s20 }
  0x45   : > { %s1629_s16 = scalar_select %p1470_p7, 1, 0 }
  0x46   : > { %s297_s23 = sand.u32 1, %s1277_s26   ;;  %p41_p9 = scmp.eq.s32.totalorder %s40_s22, 0 }
  0x47   : > { %s883_s18 = sshll.u32 %s297_s23, 4  ;;  %s896_s17 = sshll.u32 %s1285_s28, 8 }
  0x48   : > { %s1479_s19 = scalar_select %p41_p9, %s1277_s26, %s43_s21  }
  0x49   : > { %s1484_s14 = scalar_lea.hbm %s1607_s0, %s896_s17  ;;  %s301_s10 = scalar_lea.vmem [#allocation3], %s883_s18 }
  0x4a   : > { %s309_s15 = sshll.u32 %s301_s10, 4  ;;  %p1488_p2 = pnand %p1055_p3, %p52_p5  ;;  %s1492_s15 = int_to_ptr.vmem [resolvable:$true] %s309_s15 }
  0x4b   : > { %s298_s12 = scalar_lea.sflag [#allocation4], %s297_s23  ;;  %s1173_s21 = scalar_lea.hbm %s1484_s14, 256 }
  0x4c   : > { %p1174_p11 = scmp.ne.s32.totalorder %s1484_s14, %s1173_s21  ;;  %p1175_p12 = pneg %p1488_p2 }
  0x4d   : > { %s1178_s17 = scalar_lea.hbm %s1607_s0, 512  ;;  %p1179_p4 = scmp.lt.u32.totalorder %s1484_s14, %s1607_s0 }
  0x4e   : > { %p1176_p0 = pnand %p1175_p12, %p1174_p11  ;;  %p1180_p13 = scmp.lt.u32.totalorder %s1178_s17, %s1173_s21 }
  0x4f   : > { %p1182_p10 = scmp.lt.u32.totalorder %s1173_s21, %s1484_s14 }
  0x50   : > { %p1177_p1 = pneg %p1176_p0  ;;  %p1181_p6 = por %p1180_p13, %p1179_p4 }
  0x52   : > { %p1183_p3 = por %p1182_p10, %p1181_p6 }
  0x54   : > { %p1184_p5 = pnand %p1183_p3, %p1177_p1 }
  0x56   : > { %1187 = shalt.err (!%p1184_p5)
}
  0x57   : > { %s1188_s23 = scalar_lea.vmem %s1492_s15, 256  ;;  %s1295_s10 = smov [#allocation3]  }
  0x58   : > { %p1189_p9 = scmp.ne.s32.totalorder %s1492_s15, %s1188_s23  ;;  %s1193_s22 = sshll.u32 %s1295_s10, 4  ;;  %s1194_s22 = int_to_ptr.vmem [resolvable:$false] %s1193_s22 }
  0x59   : > { %s1195_s18 = scalar_lea.vmem %s1194_s22, 512  ;;  %p1196_p7 = scmp.lt.s32.totalorder %s1492_s15, %s1194_s22 }
  0x5a   : > { %p1191_p11 = pnand %p1189_p9, %p1175_p12  ;;  %p1197_p4 = scmp.lt.s32.totalorder %s1195_s18, %s1188_s23 }
  0x5c   : > { %p1192_p0 = pneg %p1191_p11  ;;  %p1198_p13 = por %p1197_p4, %p1196_p7 }
  0x5e   : > { %p1199_p6 = pnand %p1198_p13, %p1192_p0 }
  0x60   : > { %1202 = shalt.err (!%p1199_p6)
}
  0x61   : > { %1048 = dma.hbm_to_vmem [thread:$0]  (!%p1488_p2), %s1484_s14, 256, %s1492_s15, %s298_s12  }
  0x62   : > { %318 = sbr.rel (%p1391_p8) target bundleno = 809 (0x329), region = 48  ;;  %s1522_s21 = sand.u32 (!%p1391_p8), 1, %s1273_s25  }
  0x63   : > { %s887_s17 = sshll.u32 (!%p1391_p8), %s1522_s21, 4  ;;  %s321_s30 = scalar_lea.sflag (!%p1391_p8), [#allocation4], %s1522_s21 }
  0x64   : > { %s1528_s8 = scalar_lea.vmem (!%p1391_p8), [#allocation3], %s887_s17  ;;  %p1631_p7 = scmp.ne.s32.totalorder (!%p1391_p8), %s1624_s11, 0 }
  0x69   : > { %1256 = dma.done.wait (%p1631_p7), %s321_s30, 256  }
  0x6a   : > { %1258 = vsyncadd (%p1631_p7), %s321_s30, 4294967040  ;;  %p1632_p2 = scmp.ne.s32.totalorder %s1622_s9, 0 }
  0x6c   : > { %1260 = dma.done.wait (%p1632_p2), [#allocation7], 16384  }
  0x6d   : > { %1262 = vsyncadd (%p1632_p2), [#allocation7], 4294950912  ;;  %v383_v0 = vld [vmem:[#allocation6 + $0x8] sm:$0xff]  ;;  %v385_v1 = vld [vmem:[#allocation6 + $0x18] sm:$0xff]  ;;  %s897_s10 = sshll.u32 %s1281_s27, 8  ;;  %s366_s22 = scalar_lea.vmem [#allocation9], %s887_s17 }
  0x6e   : > { %v382_v2 = vld [vmem:[#allocation6] sm:$0xff]  ;;  %v898_v3 = vpack.c.bf16 %v385_v1, %v383_v0  ;;  %v384_v4 = vld [vmem:[#allocation6 + $0x10] sm:$0xff]  ;;  %v387_v5 = vld [vmem:[#allocation6 + $0x28] sm:$0xff]  ;;  %s763_s18 = sshll.u32 %s366_s22, 4  ;;  %s1558_s9 = scalar_lea.hbm %s1614_s7, %s897_s10  ;;  %s1560_s18 = int_to_ptr.vmem [resolvable:$true] %s763_s18 }
  0x6f   : > { %v389_v6 = vld [vmem:[#allocation6 + $0x38] sm:$0xff]  ;;  %v900_v7 = vpack.c.bf16 %v384_v4, %v382_v2  ;;  %v386_v9 = vld [vmem:[#allocation6 + $0x20] sm:$0xff]  ;;  %v388_v10 = vld [vmem:[#allocation6 + $0x30] sm:$0xff]  ;;  %s749_s27 = scalar_lea.sflag [#allocation5], %s1522_s21  ;;  %s1203_s11 = scalar_lea.vmem %s1560_s18, 256 }
  0x70   : > { %v902_v8 = vpack.c.bf16 %v389_v6, %v387_v5  ;;  %v391_v11 = vld [vmem:[#allocation6 + $0x48] sm:$0xff]  ;;  %899 = vmatprep.subr.bf16.mxu0 %v898_v3  ;;  %v393_v12 = vld [vmem:[#allocation6 + $0x58] sm:$0xff]  ;;  %v904_v13 = vpack.c.bf16 %v388_v10, %v386_v9  ;;  %v390_v15 = vld [vmem:[#allocation6 + $0x40] sm:$0xff]  ;;  %p1204_p8 = scmp.ne.s32.totalorder %s1560_s18, %s1203_s11  ;;  %p1633_p12 = scmp.ne.s32.totalorder %s1629_s16, 0 }
  0x71   : > { %901 = vmatpush1.bf16.msra.mxu0 %v900_v7  ;;  %v906_v14 = vpack.c.bf16 %v393_v12, %v391_v11  ;;  %v392_v16 = vld [vmem:[#allocation6 + $0x50] sm:$0xff]  ;;  %v395_v17 = vld [vmem:[#allocation6 + $0x68] sm:$0xff]  ;;  %v397_v18 = vld [vmem:[#allocation6 + $0x78] sm:$0xff]  ;;  %s1296_s17 = smov [#allocation9]  }
  0x72   : > { %903 = vmatprep.subr.bf16.mxu0 %v902_v8  ;;  %v908_v19 = vpack.c.bf16 %v392_v16, %v390_v15  ;;  %v910_v20 = vpack.c.bf16 %v397_v18, %v395_v17  ;;  %v394_v21 = vld [vmem:[#allocation6 + $0x60] sm:$0xff]  ;;  %v396_v22 = vld [vmem:[#allocation6 + $0x70] sm:$0xff]  ;;  %v399_v23 = vld [vmem:[#allocation6 + $0x88] sm:$0xff]  ;;  %p1205_p1 = pnand %p1204_p8, %p1633_p12  ;;  %s1207_s13 = sshll.u32 %s1296_s17, 4  ;;  %s1208_s13 = int_to_ptr.vmem [resolvable:$false] %s1207_s13 }
  0x73   : > { %v401_v24 = vld [vmem:[#allocation6 + $0x98] sm:$0xff]  ;;  %v912_v25 = vpack.c.bf16 %v396_v22, %v394_v21  ;;  %v398_v27 = vld [vmem:[#allocation6 + $0x80] sm:$0xff]  ;;  %v400_v28 = vld [vmem:[#allocation6 + $0x90] sm:$0xff]  ;;  %s1209_s14 = scalar_lea.vmem %s1208_s13, 512  ;;  %p1210_p3 = scmp.lt.s32.totalorder %s1560_s18, %s1208_s13 }
  0x74   : > { %v914_v26 = vpack.c.bf16 %v401_v24, %v399_v23  ;;  %v403_v29 = vld [vmem:[#allocation6 + $0xa8] sm:$0xff]  ;;  %v405_v30 = vld [vmem:[#allocation6 + $0xb8] sm:$0xff]  ;;  %v916_v31 = vpack.c.bf16 %v400_v28, %v398_v27  ;;  %v402_v33 = vld [vmem:[#allocation6 + $0xa0] sm:$0xff]  ;;  %p1206_p10 = pneg %p1205_p1  ;;  %p1211_p5 = scmp.lt.s32.totalorder %s1209_s14, %s1203_s11 }
  0x75   : > { %905 = vmatpush1.bf16.msra.mxu0 %v904_v13  ;;  %v918_v32 = vpack.c.bf16 %v405_v30, %v403_v29  ;;  %v404_v34 = vld [vmem:[#allocation6 + $0xb0] sm:$0xff]  ;;  %v407_v35 = vld [vmem:[#allocation6 + $0xc8] sm:$0xff]  ;;  %v409_v36 = vld [vmem:[#allocation6 + $0xd8] sm:$0xff] }
  0x76   : > { %907 = vmatprep.subr.bf16.mxu0 %v906_v14  ;;  %v920_v37 = vpack.c.bf16 %v404_v34, %v402_v33  ;;  %v406_v38 = vld [vmem:[#allocation6 + $0xc0] sm:$0xff]  ;;  %v408_v39 = vld [vmem:[#allocation6 + $0xd0] sm:$0xff]  ;;  %v922_v40 = vpack.c.bf16 %v409_v36, %v407_v35  ;;  %v411_v41 = vld [vmem:[#allocation6 + $0xe8] sm:$0xff]  ;;  %p1212_p9 = por %p1211_p5, %p1210_p3 }
  0x77   : > { %v413_v42 = vld [vmem:[#allocation6 + $0xf8] sm:$0xff]  ;;  %v542_v44 = vld [vmem:[#allocation8 + $0x8] sm:$0xff]  ;;  %v541_v46 = vld [vmem:[#allocation8] sm:$0xff]  ;;  %v924_v51 = vpack.c.bf16 %v408_v39, %v406_v38 }
  0x78   : > { %v381_v43 = vld [vmem:[%s1528_s8 + $0x8] sm:$0xff]  ;;  %v543_v48 = vld [vmem:[#allocation8 + $0x10] sm:$0xff]  ;;  %v545_v54 = vld [vmem:[#allocation8 + $0x20] sm:$0xff]  ;;  %v926_v57 = vpack.c.bf16 %v413_v42, %v411_v41  ;;  %p1213_p11 = pnand %p1212_p9, %p1206_p10 }
  0x79   : > { %909 = vmatpush1.bf16.msra.mxu0 %v908_v19  ;;  %522 = vmatprep.mubr.f32.mxu0 %v381_v43  ;;  %v544_v45 = vld [vmem:[#allocation8 + $0x18] sm:$0xff]  ;;  %v546_v49 = vld [vmem:[#allocation8 + $0x28] sm:$0xff]  ;;  %v964_v52 = vpack.c.bf16 %v543_v48, %v541_v46  ;;  %v547_v55 = vld [vmem:[#allocation8 + $0x30] sm:$0xff] }
  0x7a   : > { %911 = vmatprep.subr.bf16.mxu0 %v910_v20  ;;  %v962_v47 = vpack.c.bf16 %v544_v45, %v542_v44  ;;  %v548_v50 = vld [vmem:[#allocation8 + $0x38] sm:$0xff]  ;;  %v550_v56 = vld [vmem:[#allocation8 + $0x48] sm:$0xff]  ;;  %v410_v58 = vld [vmem:[#allocation6 + $0xe0] sm:$0xff]  ;;  %v968_v63 = vpack.c.bf16 %v547_v55, %v545_v54 }
  0x7b   : > { %v966_v53 = vpack.c.bf16 %v548_v50, %v546_v49  ;;  %v412_v59 = vld [vmem:[#allocation6 + $0xf0] sm:$0xff]  ;;  %v552_v60 = vld [vmem:[#allocation8 + $0x58] sm:$0xff]  ;;  %v415_v61 = vld [vmem:[#allocation6 + $0x108] sm:$0xff] }
  0x7c   : > { %963 = vmatprep.subr.bf16.mxu1 %v962_v47  ;;  %v417_v62 = vld [vmem:[#allocation6 + $0x118] sm:$0xff]  ;;  %v970_v0 = vpack.c.bf16 %v552_v60, %v550_v56  ;;  %v549_v1 = vld [vmem:[#allocation8 + $0x40] sm:$0xff]  ;;  %v551_v2 = vld [vmem:[#allocation8 + $0x50] sm:$0xff]  ;;  %v928_v3 = vpack.c.bf16 %v412_v59, %v410_v58 }
  0x7d   : > { %913 = vmatpush1.bf16.msra.mxu0 %v912_v25  ;;  %965 = vmatpush1.bf16.msra.mxu1 %v964_v52  ;;  %v554_v4 = vld [vmem:[#allocation8 + $0x68] sm:$0xff]  ;;  %v556_v5 = vld [vmem:[#allocation8 + $0x78] sm:$0xff]  ;;  %v930_v6 = vpack.c.bf16 %v417_v62, %v415_v61  ;;  %v414_v7 = vld [vmem:[#allocation6 + $0x100] sm:$0xff]  ;;  %v972_v11 = vpack.c.bf16 %v551_v2, %v549_v1 }
  0x7e   : > { %915 = vmatprep.subr.bf16.mxu0 %v914_v26  ;;  %967 = vmatprep.subr.bf16.mxu1 %v966_v53  ;;  %v416_v8 = vld [vmem:[#allocation6 + $0x110] sm:$0xff]  ;;  %v419_v9 = vld [vmem:[#allocation6 + $0x128] sm:$0xff]  ;;  %v421_v10 = vld [vmem:[#allocation6 + $0x138] sm:$0xff]  ;;  %v974_v12 = vpack.c.bf16 %v556_v5, %v554_v4 }
  0x7f   : > { %v553_v13 = vld [vmem:[#allocation8 + $0x60] sm:$0xff]  ;;  %v555_v14 = vld [vmem:[#allocation8 + $0x70] sm:$0xff]  ;;  %v932_v15 = vpack.c.bf16 %v416_v8, %v414_v7  ;;  %v558_v16 = vld [vmem:[#allocation8 + $0x88] sm:$0xff]  ;;  %v934_v18 = vpack.c.bf16 %v421_v10, %v419_v9 }
  0x80   : > { %v560_v17 = vld [vmem:[#allocation8 + $0x98] sm:$0xff]  ;;  %v418_v19 = vld [vmem:[#allocation6 + $0x120] sm:$0xff]  ;;  %v420_v20 = vld [vmem:[#allocation6 + $0x130] sm:$0xff]  ;;  %v976_v23 = vpack.c.bf16 %v555_v14, %v553_v13 }
  0x81   : > { %917 = vmatpush1.bf16.msra.mxu0 %v916_v31  ;;  %969 = vmatpush1.bf16.msra.mxu1 %v968_v63  ;;  %v423_v21 = vld [vmem:[#allocation6 + $0x148] sm:$0xff]  ;;  %v425_v22 = vld [vmem:[#allocation6 + $0x158] sm:$0xff]  ;;  %v978_v24 = vpack.c.bf16 %v560_v17, %v558_v16  ;;  %v557_v25 = vld [vmem:[#allocation8 + $0x80] sm:$0xff]  ;;  %v936_v27 = vpack.c.bf16 %v420_v20, %v418_v19 }
  0x82   : > { %919 = vmatprep.subr.bf16.mxu0 %v918_v32  ;;  %971 = vmatprep.subr.bf16.mxu1 %v970_v0  ;;  %v559_v26 = vld [vmem:[#allocation8 + $0x90] sm:$0xff]  ;;  %v562_v28 = vld [vmem:[#allocation8 + $0xa8] sm:$0xff]  ;;  %v564_v29 = vld [vmem:[#allocation8 + $0xb8] sm:$0xff]  ;;  %v938_v30 = vpack.c.bf16 %v425_v22, %v423_v21 }
  0x83   : > { %v422_v31 = vld [vmem:[#allocation6 + $0x140] sm:$0xff]  ;;  %v424_v32 = vld [vmem:[#allocation6 + $0x150] sm:$0xff]  ;;  %v427_v33 = vld [vmem:[#allocation6 + $0x168] sm:$0xff]  ;;  %v980_v35 = vpack.c.bf16 %v559_v26, %v557_v25  ;;  %v982_v36 = vpack.c.bf16 %v564_v29, %v562_v28 }
  0x84   : > { %v429_v34 = vld [vmem:[#allocation6 + $0x178] sm:$0xff]  ;;  %v563_v38 = vld [vmem:[#allocation8 + $0xb0] sm:$0xff]  ;;  %v940_v39 = vpack.c.bf16 %v424_v32, %v422_v31  ;;  %v426_v43 = vld [vmem:[#allocation6 + $0x160] sm:$0xff] }
  0x85   : > { %921 = vmatpush1.bf16.msra.mxu0 %v920_v37  ;;  %973 = vmatpush1.bf16.msra.mxu1 %v972_v11  ;;  %v561_v37 = vld [vmem:[#allocation8 + $0xa0] sm:$0xff]  ;;  %v568_v41 = vld [vmem:[#allocation8 + $0xd8] sm:$0xff]  ;;  %v942_v42 = vpack.c.bf16 %v429_v34, %v427_v33  ;;  %v428_v44 = vld [vmem:[#allocation6 + $0x170] sm:$0xff] }
  0x86   : > { %923 = vmatprep.subr.bf16.mxu0 %v922_v40  ;;  %975 = vmatprep.subr.bf16.mxu1 %v974_v12  ;;  %v566_v40 = vld [vmem:[#allocation8 + $0xc8] sm:$0xff]  ;;  %v433_v46 = vld [vmem:[#allocation6 + $0x198] sm:$0xff]  ;;  %v984_v47 = vpack.c.bf16 %v563_v38, %v561_v37  ;;  %v565_v49 = vld [vmem:[#allocation8 + $0xc0] sm:$0xff] }
  0x87   : > { %v431_v45 = vld [vmem:[#allocation6 + $0x188] sm:$0xff]  ;;  %v986_v48 = vpack.c.bf16 %v568_v41, %v566_v40  ;;  %v567_v50 = vld [vmem:[#allocation8 + $0xd0] sm:$0xff]  ;;  %v572_v53 = vld [vmem:[#allocation8 + $0xf8] sm:$0xff] }
  0x88   : > { %v570_v52 = vld [vmem:[#allocation8 + $0xe8] sm:$0xff]  ;;  %v946_v54 = vpack.c.bf16 %v433_v46, %v431_v45  ;;  %v430_v55 = vld [vmem:[#allocation6 + $0x180] sm:$0xff]  ;;  %v432_v56 = vld [vmem:[#allocation6 + $0x190] sm:$0xff]  ;;  %v988_v59 = vpack.c.bf16 %v567_v50, %v565_v49 }
  0x89   : > { %925 = vmatpush1.bf16.msra.mxu0 %v924_v51  ;;  %977 = vmatpush1.bf16.msra.mxu1 %v976_v23  ;;  %v944_v51 = vpack.c.bf16 %v428_v44, %v426_v43  ;;  %v437_v58 = vld [vmem:[#allocation6 + $0x1b8] sm:$0xff]  ;;  %v990_v60 = vpack.c.bf16 %v572_v53, %v570_v52  ;;  %v569_v61 = vld [vmem:[#allocation8 + $0xe0] sm:$0xff]  ;;  %v571_v62 = vld [vmem:[#allocation8 + $0xf0] sm:$0xff]  ;;  %v948_v63 = vpack.c.bf16 %v432_v56, %v430_v55 }
  0x8a   : > { %927 = vmatprep.subr.bf16.mxu0 %v926_v57  ;;  %979 = vmatprep.subr.bf16.mxu1 %v978_v24  ;;  %v435_v57 = vld [vmem:[#allocation6 + $0x1a8] sm:$0xff]  ;;  %v576_v1 = vld [vmem:[#allocation8 + $0x118] sm:$0xff]  ;;  %v436_v4 = vld [vmem:[#allocation6 + $0x1b0] sm:$0xff]  ;;  %v992_v7 = vpack.c.bf16 %v571_v62, %v569_v61 }
  0x8b   : > { %v574_v0 = vld [vmem:[#allocation8 + $0x108] sm:$0xff]  ;;  %v950_v2 = vpack.c.bf16 %v437_v58, %v435_v57  ;;  %v573_v9 = vld [vmem:[#allocation8 + $0x100] sm:$0xff]  ;;  %v575_v10 = vld [vmem:[#allocation8 + $0x110] sm:$0xff] }
  0x8c   : > { %v439_v5 = vld [vmem:[#allocation6 + $0x1c8] sm:$0xff]  ;;  %v994_v8 = vpack.c.bf16 %v576_v1, %v574_v0  ;;  %v580_v13 = vld [vmem:[#allocation8 + $0x138] sm:$0xff]  ;;  %v440_v16 = vld [vmem:[#allocation6 + $0x1d0] sm:$0xff]  ;;  %v996_v19 = vpack.c.bf16 %v575_v10, %v573_v9 }
  0x8d   : > { %929 = vmatpush1.bf16.msra.mxu0 %v928_v3  ;;  %981 = vmatpush1.bf16.msra.mxu1 %v980_v35  ;;  %v434_v3 = vld [vmem:[#allocation6 + $0x1a0] sm:$0xff]  ;;  %v578_v12 = vld [vmem:[#allocation8 + $0x128] sm:$0xff]  ;;  %v579_v22 = vld [vmem:[#allocation8 + $0x130] sm:$0xff] }
  0x8e   : > { %931 = vmatprep.subr.bf16.mxu0 %v930_v6  ;;  %983 = vmatprep.subr.bf16.mxu1 %v982_v36  ;;  %v441_v6 = vld [vmem:[#allocation6 + $0x1d8] sm:$0xff]  ;;  %v952_v11 = vpack.c.bf16 %v436_v4, %v434_v3  ;;  %v443_v17 = vld [vmem:[#allocation6 + $0x1e8] sm:$0xff]  ;;  %v998_v20 = vpack.c.bf16 %v580_v13, %v578_v12  ;;  %v577_v21 = vld [vmem:[#allocation8 + $0x120] sm:$0xff] }
  0x8f   : > { %v954_v14 = vpack.c.bf16 %v441_v6, %v439_v5  ;;  %v582_v24 = vld [vmem:[#allocation8 + $0x148] sm:$0xff]  ;;  %v584_v25 = vld [vmem:[#allocation8 + $0x158] sm:$0xff]  ;;  %v444_v28 = vld [vmem:[#allocation6 + $0x1f0] sm:$0xff]  ;;  %v1000_v29 = vpack.c.bf16 %v579_v22, %v577_v21 }
  0x90   : > { %v581_v31 = vld [vmem:[#allocation8 + $0x140] sm:$0xff]  ;;  %v583_v32 = vld [vmem:[#allocation8 + $0x150] sm:$0xff]  ;;  %v586_v36 = vld [vmem:[#allocation8 + $0x168] sm:$0xff] }
  0x91   : > { %933 = vmatpush1.bf16.msra.mxu0 %v932_v15  ;;  %985 = vmatpush1.bf16.msra.mxu1 %v984_v47  ;;  %v438_v15 = vld [vmem:[#allocation6 + $0x1c0] sm:$0xff]  ;;  %v1004_v34 = vpack.c.bf16 %v583_v32, %v581_v31  ;;  %v588_v37 = vld [vmem:[#allocation8 + $0x178] sm:$0xff]  ;;  %v587_v40 = vld [vmem:[#allocation8 + $0x170] sm:$0xff] }
  0x92   : > { %935 = vmatprep.subr.bf16.mxu0 %v934_v18  ;;  %987 = vmatprep.subr.bf16.mxu1 %v986_v48  ;;  %v445_v18 = vld [vmem:[#allocation6 + $0x1f8] sm:$0xff]  ;;  %v956_v23 = vpack.c.bf16 %v440_v16, %v438_v15  ;;  %v380_v35 = vld [vmem:[%s1528_s8] sm:$0xff]  ;;  %v1006_v38 = vpack.c.bf16 %v588_v37, %v586_v36  ;;  %v594_v48 = vld [vmem:[#allocation8 + $0x1a8] sm:$0xff] }
  0x93   : > { %v958_v26 = vpack.c.bf16 %v445_v18, %v443_v17  ;;  %v592_v43 = vld [vmem:[#allocation8 + $0x198] sm:$0xff]  ;;  %v589_v45 = vld [vmem:[#allocation8 + $0x180] sm:$0xff]  ;;  %v591_v46 = vld [vmem:[#allocation8 + $0x190] sm:$0xff] }
  0x94   : > { %v1012_v47 = vpack.c.bf16 %v591_v46, %v589_v45  ;;  %v596_v49 = vld [vmem:[#allocation8 + $0x1b8] sm:$0xff]  ;;  %v595_v52 = vld [vmem:[#allocation8 + $0x1b0] sm:$0xff]  ;;  %v597_v57 = vld [vmem:[#allocation8 + $0x1c0] sm:$0xff] }
  0x95   : > { %937 = vmatpush1.bf16.msra.mxu0 %v936_v27  ;;  %989 = vmatpush1.bf16.msra.mxu1 %v988_v59  ;;  %v442_v27 = vld [vmem:[#allocation6 + $0x1e0] sm:$0xff]  ;;  %v1014_v50 = vpack.c.bf16 %v596_v49, %v594_v48  ;;  %v600_v55 = vld [vmem:[#allocation8 + $0x1d8] sm:$0xff]  ;;  %v599_v58 = vld [vmem:[#allocation8 + $0x1d0] sm:$0xff] }
  0x96   : > { %939 = vmatprep.subr.bf16.mxu0 %v938_v30  ;;  %991 = vmatprep.subr.bf16.mxu1 %v990_v60  ;;  %v1002_v30 = vpack.c.bf16 %v584_v25, %v582_v24  ;;  %v960_v33 = vpack.c.bf16 %v444_v28, %v442_v27  ;;  %v1020_v59 = vpack.c.bf16 %v599_v58, %v597_v57  ;;  %v602_v60 = vld [vmem:[#allocation8 + $0x1e8] sm:$0xff]  ;;  %v604_v61 = vld [vmem:[#allocation8 + $0x1f8] sm:$0xff]  ;;  %v603_v0 = vld [vmem:[#allocation8 + $0x1f0] sm:$0xff] }
  0x97   : > { %v1022_v62 = vpack.c.bf16 %v604_v61, %v602_v60  ;;  %v446_v5 = vld [vmem:[%s1609_s2] sm:$0x3] }
  0x99   : > { %941 = vmatpush1.bf16.msra.mxu0 %v940_v39  ;;  %993 = vmatpush1.bf16.msra.mxu1 %v992_v7  ;;  %v585_v39 = vld [vmem:[#allocation8 + $0x160] sm:$0xff] }
  0x9a   : > { %943 = vmatprep.subr.bf16.mxu0 %v942_v42  ;;  %995 = vmatprep.subr.bf16.mxu1 %v994_v8  ;;  %v1008_v41 = vpack.c.bf16 %v587_v40, %v585_v39  ;;  %v590_v42 = vld [vmem:[#allocation8 + $0x188] sm:$0xff] }
  0x9b   : > { %v1010_v44 = vpack.c.bf16 %v592_v43, %v590_v42  ;;  %v732_v42 = vld [vmem:[%s1613_s6] sm:$0x3] }
  0x9d   : > { %945 = vmatpush1.bf16.msra.mxu0 %v944_v51  ;;  %997 = vmatpush1.bf16.msra.mxu1 %v996_v19  ;;  %v593_v51 = vld [vmem:[#allocation8 + $0x1a0] sm:$0xff] }
  0x9e   : > { %947 = vmatprep.subr.bf16.mxu0 %v946_v54  ;;  %999 = vmatprep.subr.bf16.mxu1 %v998_v20  ;;  %v1016_v53 = vpack.c.bf16 %v595_v52, %v593_v51  ;;  %v598_v54 = vld [vmem:[#allocation8 + $0x1c8] sm:$0xff] }
  0x9f   : > { %v1018_v56 = vpack.c.bf16 %v600_v55, %v598_v54 }
  0xa1   : > { %949 = vmatpush1.bf16.msra.mxu0 %v948_v63  ;;  %1001 = vmatpush1.bf16.msra.mxu1 %v1000_v29  ;;  %v601_v63 = vld [vmem:[#allocation8 + $0x1e0] sm:$0xff] }
  0xa2   : > { %951 = vmatprep.subr.bf16.mxu0 %v950_v2  ;;  %1003 = vmatprep.subr.bf16.mxu1 %v1002_v30  ;;  %v1024_v1 = vpack.c.bf16 %v603_v0, %v601_v63  ;;  %v448_v2 = vlaneseq }
  0xa4   : > { %v449_v3 = vshrl.u32 %v448_v2, 7 }
  0xa5   : > { %953 = vmatpush1.bf16.msra.mxu0 %v952_v11  ;;  %1005 = vmatpush1.bf16.msra.mxu1 %v1004_v34 }
  0xa6   : > { %955 = vmatprep.subr.bf16.mxu0 %v954_v14  ;;  %1007 = vmatprep.subr.bf16.mxu1 %v1006_v38  ;;  %v450_v4 = vsub.s32 0, %v449_v3  ;;  %v454_v6 = vsub.s32 1, %v449_v3 }
  0xa8   : > { %v451_v7 = vrot.slane %v446_v5, %v450_v4  ;;  %v455_v8 = vrot.slane %v446_v5, %v454_v6  ;;  %v741_v51 = vrot.slane %v732_v42, %v454_v6 }
  0xa9   : > { %957 = vmatpush1.bf16.msra.mxu0 %v956_v23  ;;  %1009 = vmatpush1.bf16.msra.mxu1 %v1008_v41  ;;  %v685_v23 = vld [vmem:[%s1611_s4] sm:$0x3] }
  0xaa   : > { %959 = vmatprep.subr.bf16.mxu0 %v958_v26  ;;  %1011 = vmatprep.subr.bf16.mxu1 %v1010_v44  ;;  %v690_v24 = vrot.slane %v685_v23, %v450_v4  ;;  %v694_v25 = vrot.slane %v685_v23, %v454_v6  ;;  %v718_v41 = vld [vmem:[%s1612_s5] sm:$0x3] }
  0xab   : > { %v723_v45 = vrot.slane %v718_v41, %v450_v4  ;;  %v727_v46 = vrot.slane %v718_v41, %v454_v6 }
  0xad   : > { %961 = vmatpush1.bf16.msra.mxu0 %v960_v33  ;;  %1013 = vmatpush1.bf16.msra.mxu1 %v1012_v47 }
  0xae   : > { %1015 = vmatprep.subr.bf16.mxu1 %v1014_v50  ;;  %v737_v50 = vrot.slane %v732_v42, %v450_v4 }
  0xb0   : > { %523 = vmatmul.mubr.f32.vlgmr.msra.gmra.mrb[0].mxu0 %v380_v35 }
  0xb1   : > { %1017 = vmatpush1.bf16.msra.mxu1 %v1016_v53 }
  0xb2   : > { %1019 = vmatprep.subr.bf16.mxu1 %v1018_v56 }
  0xb5   : > { %1021 = vmatpush1.bf16.msra.mxu1 %v1020_v59 }
  0xb6   : > { %1023 = vmatprep.subr.bf16.mxu1 %v1022_v62 }
  0xb9   : > { %1025 = vmatpush1.bf16.msra.mxu1 %v1024_v1 }
 0x183   : > { %v524_v9 = vpop.f32.mrb[0].mxu0 }
 0x184   : > { %v525_v10 = vadd.f32 %v524_v9, %v451_v7  ;;  %v526_v11 = vpop.f32.mrb[1].mxu0 }
 0x185   : > { %v527_v12 = vadd.f32 %v526_v11, %v455_v8 }
 0x186   : > { %v531_v13 = vmul.f32 0.70710677, %v525_v10  ;;  %v529_v20 = vmul.f32 0.5, %v525_v10 }
 0x187   : > { %v532_v14 = vmul.f32 0.70710677, %v527_v12  ;;  %v530_v18 = vmul.f32 0.5, %v527_v12 }
 0x188   : > { %1111 = verf.f32 %v531_v13 }
 0x189   : > { %1113 = verf.f32 %v532_v14 }
 0x192   : > { %v1112_v15 = vpop.eup %1111 }
 0x193   : > { %v1114_v16 = vpop.eup %1113  ;;  %v535_v17 = vadd.f32 1.0, %v1112_v15 }
 0x194   : > { %v536_v19 = vadd.f32 1.0, %v1114_v16 }
 0x195   : > { %v537_v22 = vmul.f32 %v535_v17, %v529_v20 }
 0x196   : > { %v538_v21 = vmul.f32 %v536_v19, %v530_v18 }
 0x198   : > { %669 = vmatprep.mubr.f32.mxu1 %v538_v21 }
 0x199   : > { %670 = vmatmul.mubr.f32.vlgmr.msra.gmra.mrb[0].mxu1 %v537_v22 }
 0x26c   : > { %v671_v26 = vpop.f32.mrb[0].mxu1 }
 0x26d   : > { %v697_v27 = vadd.f32 %v690_v24, %v671_v26  ;;  %v673_v28 = vpop.f32.mrb[1].mxu1 }
 0x26e   : > { %v698_v29 = vadd.f32 %v694_v25, %v673_v28 }
 0x26f   : > { %v704_v31 = vmul.f32 %v697_v27, %v697_v27 }
 0x270   : > { %v699_v30 = vadd.f32 %v698_v29, %v697_v27  ;;  %v705_v32 = vmul.f32 %v698_v29, %v698_v29 }
 0x272   : > { %700 = vadd.xlane.f32.xlu0 %v699_v30  ;;  %v706_v33 = vadd.f32 %v705_v32, %v704_v31 }
 0x276   : > { %707 = vadd.xlane.f32.xlu0 %v706_v33 }
 0x2ff   : > { %v701_v34 = vpop.xlane.xlu0 %700 }
 0x300   : > { %v703_v35 = vmul.f32 0.00390625, %v701_v34 }
 0x302   : > { %v710_v37 = vmul.f32 %v703_v35, %v703_v35  ;;  %v712_v43 = vsub.f32 %v697_v27, %v703_v35  ;;  %v713_v44 = vsub.f32 %v698_v29, %v703_v35 }
 0x303   : > { %v708_v36 = vpop.xlane.xlu0 %707 }
 0x304   : > { %v709_v38 = vmul.f32 0.00390625, %v708_v36 }
 0x306   : > { %v711_v39 = vsub.f32 %v709_v38, %v710_v37 }
 0x308   : > { %v714_v40 = vadd.f32 1e-05, %v711_v39 }
 0x30a   : > { %1115 = vrsqrt.f32 %v714_v40 }
 0x314   : > { %v1116_v47 = vpop.eup %1115 }
 0x315   : > { %v716_v48 = vmul.f32 %v1116_v47, %v712_v43  ;;  %v717_v49 = vmul.f32 %v1116_v47, %v713_v44 }
 0x317   : > { %v730_v52 = vmul.f32 %v723_v45, %v716_v48  ;;  %v731_v53 = vmul.f32 %v727_v46, %v717_v49 }
 0x319   : > { %v744_v54 = vadd.f32 %v737_v50, %v730_v52  ;;  %v745_v55 = vadd.f32 %v741_v51, %v731_v53 }
 0x31b   : > { %746 = vst [vmem:[%s366_s22] sm:$0xff] %v744_v54  ;;  %747 = vst [vmem:[%s366_s22 + $0x8] sm:$0xff] %v745_v55 }
 0x31c   : > { %1216 = shalt.err (!%p1213_p11)
}
 0x31d   : > { %s1217_s21 = scalar_lea.hbm %s1558_s9, 256  ;;  %s1221_s12 = scalar_lea.hbm %s1614_s7, 512 }
 0x31e   : > { %p1218_p0 = scmp.ne.s32.totalorder %s1558_s9, %s1217_s21  ;;  %p1222_p6 = scmp.lt.u32.totalorder %s1558_s9, %s1614_s7 }
 0x31f   : > { %p1223_p7 = scmp.lt.u32.totalorder %s1221_s12, %s1217_s21  ;;  %p1225_p8 = scmp.lt.u32.totalorder %s1217_s21, %s1558_s9 }
 0x320   : > { %p1219_p4 = pnand %p1218_p0, %p1633_p12 }
 0x321   : > { %p1224_p2 = por %p1223_p7, %p1222_p6 }
 0x322   : > { %p1220_p13 = pneg %p1219_p4 }
 0x323   : > { %p1226_p1 = por %p1225_p8, %p1224_p2 }
 0x325   : > { %p1227_p10 = pnand %p1226_p1, %p1220_p13 }
 0x327   : > { %1230 = shalt.err (!%p1227_p10)
}
 0x328   : > { %1036 = dma.vmem_to_hbm [thread:$0]  (%p1633_p12), %s1560_s18, 256, %s1558_s9, %s749_s27  }
 0x329 PF: > { %s1634_s22 = sld [smem:[#allocation13_spill]]  ;;  %s1635_s30 = sld [smem:[#allocation14_spill]] }
 0x32a   : > { %p1637_p5 = scmp.ge.s32.totalorder %s1289_s29, 2 }
 0x32f   : > { %s775_s8 = sand.u32 1, %s1634_s22   ;;  %p1636_p3 = scmp.ne.s32.totalorder %s1635_s30, 0 }
 0x330   : > { %s776_s11 = scalar_lea.sflag [#allocation5], %s775_s8 }
 0x331   : > { %p1050_p9 = pnand %p1637_p5, %p1636_p3 }
 0x333   : > { %1264 = dma.done.wait (!%p1050_p9), %s776_s11, 256  }
 0x334   : > { %1266 = vsyncadd (!%p1050_p9), %s776_s11, 4294967040  ;;  %s24_s29 = sadd.s32 1, %s1289_s29   ;;  %s1638_s24 = smov %s1273_s25 }
 0x335   : > { %p21_p11 = scmp.ge.s32.totalorder %s24_s29, 4   ;;  %s1639_s25 = smov %s1277_s26 }
 0x336   : > { %s1640_s26 = smov %s1479_s19  ;;  %s1641_s27 = smov %s1285_s28 }
 0x337   : > { %s1642_s28 = smov %s1644_s20  ;;  %23 = sbr.rel (!%p21_p11) target bundleno = 7 (0x7), region = 114 }
 0x33e   :  { %781 = vsyncpa [#allocation4], 1 }
 0x33f   :  { %783 = vsyncpa [#allocation4 + $0x1], 1 }
 0x340   :  { %784 = vsyncpa [#allocation7], 1 }
 0x341   :  { %785 = vsyncpa [#allocation5], 1 }
 0x342   :  { %787 = vsyncpa [#allocation5 + $0x1], 1 }

</bundles_post_ra>
